<compile_context>
chip_gen: v5e
topology: v5e:2x2
jax: 0.10.0
libtpu: 0.0.40
codegen_flags: <defaults>
</compile_context>

<pallas_src>
import jax
import jax.numpy as jnp
from jax import lax
from jax.experimental import pallas as pl
from jax.experimental.pallas import tpu as pltpu

EPS = 1e-5
NEG_SLOPE = 0.1

# MXU input precision for the im2col matmul.  f32 is safe on every chip
# (v5e has no bf16 VPU); flip to jnp.bfloat16 on v6e/v7x for full-rate MXU.
# Accumulation stays f32 via preferred_element_type either way.
MXU_INPUT_DTYPE = jnp.float32


def _bn_conv_lrelu_kernel(xc_ref, xt_ref, xb_ref, scale_ref, shift_ref,
                          w_ref, o_ref):
    """Fused (folded) BN + 3x3 same-conv + LeakyReLU on one row-tile.

    xc_ref:    (TH, W, Cin)   center rows of this tile
    xt_ref:    (1,  W, Cin)   row above the tile (clamped at the top edge)
    xb_ref:    (1,  W, Cin)   row below the tile (clamped at the bottom edge)
    scale_ref: (1, Cin)       gamma / sqrt(var + eps)
    shift_ref: (1, Cin)       beta - mean * scale
    w_ref:     (9*Cin, Cp)    im2col-packed conv weights, zero-padded to Cp
    o_ref:     (Cout, TH*W)   lane-dense output slab
    """
    TH, W, Cin = xc_ref.shape
    K2Cin, Cp = w_ref.shape
    Cout, THW = o_ref.shape
    assert K2Cin == 9 * Cin and THW == TH * W  # 3x3 kernel, trace-time check

    i = pl.program_id(1)
    n_row = pl.num_programs(1)

    scale = scale_ref[...].reshape(1, 1, Cin)
    shift = shift_ref[...].reshape(1, 1, Cin)

    # Normalize (BN folded into per-channel scale/shift), f32.
    xc = xc_ref[...].astype(jnp.float32) * scale + shift
    # Halo rows: same normalization, zeroed at the image border (padding is
    # applied AFTER BN, exactly like PyTorch's zero padding of the conv).
    top_keep = (i > 0).astype(jnp.float32)
    bot_keep = (i < n_row - 1).astype(jnp.float32)
    xt = (xt_ref[...].astype(jnp.float32) * scale + shift) * top_keep
    xb = (xb_ref[...].astype(jnp.float32) * scale + shift) * bot_keep

    # Halo-extended tile with zero W-padding, built in registers
    # (no zero-then-overwrite VMEM scratch).
    xe = jnp.concatenate([xt, xc, xb], axis=0)              # (TH+2, W, Cin)
    zcol = jnp.zeros((TH + 2, 1, Cin), jnp.float32)
    xe = jnp.concatenate([zcol, xe, zcol], axis=1)          # (TH+2, W+2, Cin)

    # im2col: the 9 shifted windows stacked along the channel axis, then one
    # (TH*W, 9*Cin) x (9*Cin, Cp) matmul instead of 9 tiny K=Cin matmuls.
    patches = jnp.concatenate(
        [xe[kh:kh + TH, kw:kw + W, :] for kh in range(3) for kw in range(3)],
        axis=-1)                                            # (TH, W, 9*Cin)
    patches = patches.reshape(TH * W, K2Cin)

    acc = jnp.dot(patches.astype(MXU_INPUT_DTYPE),
                  w_ref[...].astype(MXU_INPUT_DTYPE),
                  preferred_element_type=jnp.float32)       # (TH*W, Cp)

    # Lane-dense epilogue: transpose the 128-multiple-shaped accumulator,
    # keep the real Cout rows, LeakyReLU(0.1), unmasked 128-lane store.
    acc_t = acc.T[:Cout, :]                                 # (Cout, TH*W)
    o_ref[...] = jnp.where(acc_t > 0, acc_t, NEG_SLOPE * acc_t).astype(
        o_ref.dtype)


def _pick_row_tile(H, W):
    """Smallest row tile (>=8 rows) whose flattened spatial block is a
    multiple of 128 lanes (lane-dense output slab)."""
    for th in (8, 16, 32, 64, 128):
        if H % th == 0 and (th * W) % 128 == 0:
            return th
    # Fall back to a single row tile (block == full dims is always legal).
    # TODO(synk): for exotic H*W not divisible by 128, add an un-transposed
    # fallback epilogue; the shapes implied by this module don't need it.
    return H


def block2d_forward(x_nchw, w_oihw, gamma, beta):
    """PyTorch-facing wrapper: NCHW in, NCHW out (training-mode BN stats)."""
    N, Cin, H, W = x_nchw.shape
    Cout, Cin_w, KH, KW = w_oihw.shape
    assert (Cin_w, KH, KW) == (Cin, 3, 3), "Block2D uses a 3x3 conv, pad=1"

    # ---- BatchNorm2d batch statistics: one pass, biased var, f32 ----------
    xf = x_nchw.astype(jnp.float32)
    cnt = N * H * W
    s1 = jnp.sum(xf, axis=(0, 2, 3))
    s2 = jnp.sum(xf * xf, axis=(0, 2, 3))
    mean = s1 / cnt
    var = s2 / cnt - mean * mean
    inv_std = lax.rsqrt(var + EPS)
    scale = gamma.astype(jnp.float32) * inv_std                 # (Cin,)
    shift = beta.astype(jnp.float32) - mean * scale             # (Cin,)
    scale2d = scale.reshape(1, Cin)
    shift2d = shift.reshape(1, Cin)

    # ---- one-time repacks, hoisted out of the kernel -----------------------
    x_nhwc = jnp.transpose(x_nchw, (0, 2, 3, 1))                # (N,H,W,Cin)
    # OIHW -> (KH*KW*Cin, Cout), zero-padded to 128 output lanes so the MXU
    # result / store are lane-dense.
    Cp = ((Cout + 127) // 128) * 128
    w2 = jnp.transpose(w_oihw, (2, 3, 1, 0)).reshape(KH * KW * Cin, Cout)
    w2p = jnp.pad(w2.astype(jnp.float32), ((0, 0), (0, Cp - Cout)))

    TH = _pick_row_tile(H, W)
    n_row = H // TH

    out = pl.pallas_call(
        _bn_conv_lrelu_kernel,
        out_shape=jax.ShapeDtypeStruct((N, Cout, H * W), x_nchw.dtype),
        grid_spec=pltpu.PrefetchScalarGridSpec(
            num_scalar_prefetch=0,
            grid=(N, n_row),
            in_specs=[
                # center rows of this tile
                pl.BlockSpec((None, TH, W, Cin),
                             lambda n, i: (n, i, 0, 0)),
                # 1-row top halo (clamped; masked to zero at the top edge)
                pl.BlockSpec((None, 1, W, Cin),
                             lambda n, i: (n, jnp.maximum(i * TH - 1, 0),
                                           0, 0)),
                # 1-row bottom halo (clamped; masked at the bottom edge)
                pl.BlockSpec((None, 1, W, Cin),
                             lambda n, i: (n, jnp.minimum((i + 1) * TH, H - 1),
                                           0, 0)),
                pl.BlockSpec((1, Cin), lambda n, i: (0, 0)),
                pl.BlockSpec((1, Cin), lambda n, i: (0, 0)),
                pl.BlockSpec((KH * KW * Cin, Cp), lambda n, i: (0, 0)),
            ],
            out_specs=pl.BlockSpec((None, Cout, TH * W),
                                   lambda n, i: (n, 0, i)),
        ),
        compiler_params=pltpu.CompilerParams(
            dimension_semantics=("parallel", "parallel")),
    )(x_nhwc, x_nhwc, x_nhwc, scale2d, shift2d, w2p)

    # (N, Cout, H*W) -> NCHW is a free reshape (no transpose needed).
    return out.reshape(N, Cout, H, W)


def _reference(x_nchw, w_oihw, gamma, beta):
    """Pure-JAX reference of the PyTorch forward (training-mode BN)."""
    mean = x_nchw.mean(axis=(0, 2, 3), keepdims=True)
    var = ((x_nchw - mean) ** 2).mean(axis=(0, 2, 3), keepdims=True)  # biased
    xn = (x_nchw - mean) * lax.rsqrt(var + EPS)
    xn = xn * gamma.reshape(1, -1, 1, 1) + beta.reshape(1, -1, 1, 1)
    y = lax.conv_general_dilated(
        xn, w_oihw, window_strides=(1, 1), padding="SAME",
        dimension_numbers=("NCHW", "OIHW", "NCHW"))
    return jnp.where(y > 0, y, NEG_SLOPE * y)


if __name__ == "__main__":
    # Shapes consistent with Block2D(cin=4, cout=8): batch=2, spatial 16x16.
    N, CIN, COUT, H, W, K = 2, 4, 8, 16, 16, 3

    key = jax.random.PRNGKey(0)
    kx, kw = jax.random.split(key)

    x = jax.random.normal(kx, (N, CIN, H, W), dtype=jnp.float32)

    # Conv2d default (kaiming-uniform-like) init, deterministic.
    fan_in = CIN * K * K
    bound = 1.0 / jnp.sqrt(fan_in)
    w = jax.random.uniform(kw, (COUT, CIN, K, K),
                           minval=-bound, maxval=bound, dtype=jnp.float32)

    # BatchNorm2d default init: gamma=1, beta=0.
    gamma = jnp.ones((CIN,), jnp.float32)
    beta = jnp.zeros((CIN,), jnp.float32)

    out = block2d_forward(x, w, gamma, beta)
    out = jax.block_until_ready(out)

    ref = _reference(x, w, gamma, beta)
    assert out.shape == (N, COUT, H, W), out.shape
    max_err = float(jnp.max(jnp.abs(out - ref)))
    assert jnp.allclose(out, ref, atol=1e-3, rtol=1e-3), max_err

    print("KERNEL_OK")
</pallas_src>

<mosaic_0001>
module attributes {stable_mosaic.version = 11 : i64} {
  func.func @_bn_conv_lrelu_kernel(%arg0: i32, %arg1: i32, %arg2: memref<1x8x16x4xf32, #tpu.memory_space<vmem>>, %arg3: memref<1x1x16x4xf32, #tpu.memory_space<vmem>>, %arg4: memref<1x1x16x4xf32, #tpu.memory_space<vmem>>, %arg5: memref<1x4xf32, #tpu.memory_space<vmem>>, %arg6: memref<1x4xf32, #tpu.memory_space<vmem>>, %arg7: memref<36x128xf32, #tpu.memory_space<vmem>>, %arg8: memref<1x8x128xf32, #tpu.memory_space<vmem>>) attributes {dimension_semantics = [#tpu.dimension_semantics<parallel>, #tpu.dimension_semantics<parallel>], iteration_bounds = array<i64: 2, 2>, scalar_prefetch = 0 : i64, scratch_operands = 0 : i64, tpu.core_type = #tpu.core_type<tc>, window_params = [{transform_indices = @transform_0, window_bounds = array<i64: 1, 8, 16, 4>}, {transform_indices = @transform_1, window_bounds = array<i64: 1, 1, 16, 4>}, {transform_indices = @transform_2, window_bounds = array<i64: 1, 1, 16, 4>}, {pipeline_mode = #tpu.pipeline_mode<synchronous>, transform_indices = @transform_3, window_bounds = array<i64: 1, 4>}, {pipeline_mode = #tpu.pipeline_mode<synchronous>, transform_indices = @transform_4, window_bounds = array<i64: 1, 4>}, {pipeline_mode = #tpu.pipeline_mode<synchronous>, transform_indices = @transform_5, window_bounds = array<i64: 36, 128>}, {transform_indices = @transform_6, window_bounds = array<i64: 1, 8, 128>}]} {
    %c0 = arith.constant 0 : index
    %c0_0 = arith.constant 0 : index
    %0 = vector.load %arg5[%c0, %c0_0] : memref<1x4xf32, #tpu.memory_space<vmem>>, vector<1x4xf32>
    %1 = vector.shape_cast %0 : vector<1x4xf32> to vector<1x1x4xf32>
    %c0_1 = arith.constant 0 : index
    %c0_2 = arith.constant 0 : index
    %2 = vector.load %arg6[%c0_1, %c0_2] : memref<1x4xf32, #tpu.memory_space<vmem>>, vector<1x4xf32>
    %3 = vector.shape_cast %2 : vector<1x4xf32> to vector<1x1x4xf32>
    %c0_3 = arith.constant 0 : index
    %c0_4 = arith.constant 0 : index
    %c0_5 = arith.constant 0 : index
    %c0_6 = arith.constant 0 : index
    %4 = vector.load %arg2[%c0_3, %c0_4, %c0_5, %c0_6] : memref<1x8x16x4xf32, #tpu.memory_space<vmem>>, vector<1x8x16x4xf32>
    %5 = vector.shape_cast %4 : vector<1x8x16x4xf32> to vector<8x16x4xf32>
    %6 = vector.broadcast %1 : vector<1x1x4xf32> to vector<8x16x4xf32>
    %7 = arith.mulf %5, %6 : vector<8x16x4xf32>
    %8 = vector.broadcast %3 : vector<1x1x4xf32> to vector<8x16x4xf32>
    %9 = arith.addf %7, %8 : vector<8x16x4xf32>
    %c0_i32 = arith.constant 0 : i32
    %10 = arith.cmpi sgt, %arg1, %c0_i32 : i32
    %11 = arith.extui %10 : i1 to i32
    %12 = arith.sitofp %11 : i32 to f32
    %c1_i32 = arith.constant 1 : i32
    %13 = arith.cmpi slt, %arg1, %c1_i32 : i32
    %14 = arith.extui %13 : i1 to i32
    %15 = arith.sitofp %14 : i32 to f32
    %c0_7 = arith.constant 0 : index
    %c0_8 = arith.constant 0 : index
    %c0_9 = arith.constant 0 : index
    %c0_10 = arith.constant 0 : index
    %16 = vector.load %arg3[%c0_7, %c0_8, %c0_9, %c0_10] : memref<1x1x16x4xf32, #tpu.memory_space<vmem>>, vector<1x1x16x4xf32>
    %17 = vector.shape_cast %16 : vector<1x1x16x4xf32> to vector<1x16x4xf32>
    %18 = vector.broadcast %1 : vector<1x1x4xf32> to vector<1x16x4xf32>
    %19 = arith.mulf %17, %18 : vector<1x16x4xf32>
    %20 = vector.broadcast %3 : vector<1x1x4xf32> to vector<1x16x4xf32>
    %21 = arith.addf %19, %20 : vector<1x16x4xf32>
    %22 = vector.broadcast %12 : f32 to vector<1x16x4xf32>
    %23 = arith.mulf %21, %22 : vector<1x16x4xf32>
    %c0_11 = arith.constant 0 : index
    %c0_12 = arith.constant 0 : index
    %c0_13 = arith.constant 0 : index
    %c0_14 = arith.constant 0 : index
    %24 = vector.load %arg4[%c0_11, %c0_12, %c0_13, %c0_14] : memref<1x1x16x4xf32, #tpu.memory_space<vmem>>, vector<1x1x16x4xf32>
    %25 = vector.shape_cast %24 : vector<1x1x16x4xf32> to vector<1x16x4xf32>
    %26 = vector.broadcast %1 : vector<1x1x4xf32> to vector<1x16x4xf32>
    %27 = arith.mulf %25, %26 : vector<1x16x4xf32>
    %28 = vector.broadcast %3 : vector<1x1x4xf32> to vector<1x16x4xf32>
    %29 = arith.addf %27, %28 : vector<1x16x4xf32>
    %30 = vector.broadcast %15 : f32 to vector<1x16x4xf32>
    %31 = arith.mulf %29, %30 : vector<1x16x4xf32>
    %32 = tpu.concatenate %23, %9, %31 in 0 : vector<1x16x4xf32>, vector<8x16x4xf32>, vector<1x16x4xf32> -> vector<10x16x4xf32>
    %cst = arith.constant 0.000000e+00 : f32
    %33 = vector.broadcast %cst : f32 to vector<10x1x4xf32>
    %34 = tpu.concatenate %33, %32, %33 in 1 : vector<10x1x4xf32>, vector<10x16x4xf32>, vector<10x1x4xf32> -> vector<10x18x4xf32>
    %35 = vector.extract_strided_slice %34 {offsets = [0, 0, 0], sizes = [8, 16, 4], strides = [1, 1, 1]} : vector<10x18x4xf32> to vector<8x16x4xf32>
    %36 = vector.extract_strided_slice %34 {offsets = [0, 1, 0], sizes = [8, 16, 4], strides = [1, 1, 1]} : vector<10x18x4xf32> to vector<8x16x4xf32>
    %37 = vector.extract_strided_slice %34 {offsets = [0, 2, 0], sizes = [8, 16, 4], strides = [1, 1, 1]} : vector<10x18x4xf32> to vector<8x16x4xf32>
    %38 = vector.extract_strided_slice %34 {offsets = [1, 0, 0], sizes = [8, 16, 4], strides = [1, 1, 1]} : vector<10x18x4xf32> to vector<8x16x4xf32>
    %39 = vector.extract_strided_slice %34 {offsets = [1, 1, 0], sizes = [8, 16, 4], strides = [1, 1, 1]} : vector<10x18x4xf32> to vector<8x16x4xf32>
    %40 = vector.extract_strided_slice %34 {offsets = [1, 2, 0], sizes = [8, 16, 4], strides = [1, 1, 1]} : vector<10x18x4xf32> to vector<8x16x4xf32>
    %41 = vector.extract_strided_slice %34 {offsets = [2, 0, 0], sizes = [8, 16, 4], strides = [1, 1, 1]} : vector<10x18x4xf32> to vector<8x16x4xf32>
    %42 = vector.extract_strided_slice %34 {offsets = [2, 1, 0], sizes = [8, 16, 4], strides = [1, 1, 1]} : vector<10x18x4xf32> to vector<8x16x4xf32>
    %43 = vector.extract_strided_slice %34 {offsets = [2, 2, 0], sizes = [8, 16, 4], strides = [1, 1, 1]} : vector<10x18x4xf32> to vector<8x16x4xf32>
    %44 = tpu.concatenate %35, %36, %37, %38, %39, %40, %41, %42, %43 in 2 : vector<8x16x4xf32>, vector<8x16x4xf32>, vector<8x16x4xf32>, vector<8x16x4xf32>, vector<8x16x4xf32>, vector<8x16x4xf32>, vector<8x16x4xf32>, vector<8x16x4xf32>, vector<8x16x4xf32> -> vector<8x16x36xf32>
    %45 = vector.shape_cast %44 : vector<8x16x36xf32> to vector<128x36xf32>
    %c0_15 = arith.constant 0 : index
    %c0_16 = arith.constant 0 : index
    %46 = vector.load %arg7[%c0_15, %c0_16] : memref<36x128xf32, #tpu.memory_space<vmem>>, vector<36x128xf32>
    %cst_17 = arith.constant dense<0.000000e+00> : vector<128x128xf32>
    %47 = tpu.matmul %45, %46, %cst_17 {dimension_numbers = #tpu.dot_dimension_numbers<[1], [0], [0], [1], [0, 0, 1, 1], [], []>} : vector<128x36xf32>, vector<36x128xf32>, vector<128x128xf32> -> vector<128x128xf32>
    %48 = tpu.transpose %47, [1, 0] : vector<128x128xf32> -> vector<128x128xf32>
    %49 = vector.extract_strided_slice %48 {offsets = [0, 0], sizes = [8, 128], strides = [1, 1]} : vector<128x128xf32> to vector<8x128xf32>
    %cst_18 = arith.constant 0.000000e+00 : f32
    %50 = vector.broadcast %cst_18 : f32 to vector<8x128xf32>
    %51 = arith.cmpf ogt, %49, %50 : vector<8x128xf32>
    %cst_19 = arith.constant 1.000000e-01 : f32
    %52 = vector.broadcast %cst_19 : f32 to vector<8x128xf32>
    %53 = arith.mulf %52, %49 : vector<8x128xf32>
    %54 = arith.select %51, %49, %53 : vector<8x128xi1>, vector<8x128xf32>
    %c0_20 = arith.constant 0 : index
    %c0_21 = arith.constant 0 : index
    %c0_22 = arith.constant 0 : index
    %55 = vector.load %arg8[%c0_20, %c0_21, %c0_22] : memref<1x8x128xf32, #tpu.memory_space<vmem>>, vector<1x8x128xf32>
    %56 = vector.shape_cast %55 : vector<1x8x128xf32> to vector<8x128xf32>
    %57 = vector.shape_cast %54 : vector<8x128xf32> to vector<1x8x128xf32>
    tpu.vector_store %arg8[%c0_20, %c0_21, %c0_22], %57 {strides = array<i32>} : memref<1x8x128xf32, #tpu.memory_space<vmem>>, vector<1x8x128xf32>,
    return
  }
  func.func @transform_0(%arg0: i32, %arg1: i32) -> (i32, i32, i32, i32) {
    %c0_i32 = arith.constant 0 : i32
    %c0_i32_0 = arith.constant 0 : i32
    %c0_i32_1 = arith.constant 0 : i32
    return %arg0, %arg1, %c0_i32, %c0_i32_0 : i32, i32, i32, i32
  }
  func.func @transform_1(%arg0: i32, %arg1: i32) -> (i32, i32, i32, i32) {
    %c8_i32 = arith.constant 8 : i32
    %0 = arith.muli %arg1, %c8_i32 : i32
    %c1_i32 = arith.constant 1 : i32
    %1 = arith.subi %0, %c1_i32 : i32
    %c0_i32 = arith.constant 0 : i32
    %2 = arith.maxsi %1, %c0_i32 : i32
    %c0_i32_0 = arith.constant 0 : i32
    %c0_i32_1 = arith.constant 0 : i32
    %c0_i32_2 = arith.constant 0 : i32
    return %arg0, %2, %c0_i32_0, %c0_i32_1 : i32, i32, i32, i32
  }
  func.func @transform_2(%arg0: i32, %arg1: i32) -> (i32, i32, i32, i32) {
    %c1_i32 = arith.constant 1 : i32
    %0 = arith.addi %arg1, %c1_i32 : i32
    %c8_i32 = arith.constant 8 : i32
    %1 = arith.muli %0, %c8_i32 : i32
    %c15_i32 = arith.constant 15 : i32
    %2 = arith.minsi %1, %c15_i32 : i32
    %c0_i32 = arith.constant 0 : i32
    %c0_i32_0 = arith.constant 0 : i32
    %c0_i32_1 = arith.constant 0 : i32
    return %arg0, %2, %c0_i32, %c0_i32_0 : i32, i32, i32, i32
  }
  func.func @transform_3(%arg0: i32, %arg1: i32) -> (i32, i32) {
    %c0_i32 = arith.constant 0 : i32
    %c0_i32_0 = arith.constant 0 : i32
    %c0_i32_1 = arith.constant 0 : i32
    return %c0_i32, %c0_i32_0 : i32, i32
  }
  func.func @transform_4(%arg0: i32, %arg1: i32) -> (i32, i32) {
    %c0_i32 = arith.constant 0 : i32
    %c0_i32_0 = arith.constant 0 : i32
    %c0_i32_1 = arith.constant 0 : i32
    return %c0_i32, %c0_i32_0 : i32, i32
  }
  func.func @transform_5(%arg0: i32, %arg1: i32) -> (i32, i32) {
    %c0_i32 = arith.constant 0 : i32
    %c0_i32_0 = arith.constant 0 : i32
    %c0_i32_1 = arith.constant 0 : i32
    return %c0_i32, %c0_i32_0 : i32, i32
  }
  func.func @transform_6(%arg0: i32, %arg1: i32) -> (i32, i32, i32) {
    %c0_i32 = arith.constant 0 : i32
    %c0_i32_0 = arith.constant 0 : i32
    return %arg0, %c0_i32, %arg1 : i32, i32, i32
  }
}

</mosaic_0001>

<bundles_post_ra>
// kernel: tpu_custom_call.1
= control target key start
LH: loop header
LB: loop body
LE: loop exit
PB: predicated region body
PF: predicated region fallthrough
CT: control target
= control target key end

     0   :  { %11 = vsyncpa [#allocation3], 0  ;;  %s2847_s0 = inlined_call_operand.vmem [shape: f32[2,16,16,4], index: 0, kind: input, shape index: {}]   ;;  %s2848_s1 = inlined_call_operand.vmem [shape: f32[2,16,16,4], index: 1, kind: input, shape index: {}]   ;;  %s2849_s2 = inlined_call_operand.vmem [shape: f32[2,16,16,4], index: 2, kind: input, shape index: {}]   ;;  %s2850_s3 = inlined_call_operand.vmem [shape: f32[1,4], index: 3, kind: input, shape index: {}]   ;;  %s2851_s4 = inlined_call_operand.vmem [shape: f32[1,4], index: 4, kind: input, shape index: {}]   ;;  %s2852_s5 = inlined_call_operand.vmem [shape: f32[36,128], index: 5, kind: input, shape index: {}]   ;;  %s2853_s6 = inlined_call_operand.hbm [shape: f32[2,8,256], index: 6, kind: output, shape index: {}]  }
   0x1   :  { %13 = vsyncpa [#allocation3 + $0x1], 0  ;;  %s1828_s21 = smov 0   ;;  %s1830_s22 = smov 0  }
   0x2   :  { %s1832_s23 = smov 0   ;;  %s1834_s24 = smov 0  }
   0x3   :  { %s1836_s25 = smov 0   ;;  %s1838_s26 = smov 0  }
   0x4   :  { %s1840_s27 = smov 0   ;;  %s1842_s28 = smov 0  }
   0x5 LB: > { %2864 = sst [smem:[#allocation5_spill]] %s1779_s27  ;;  %s1528_s29 = sadd.s32 4294967295, %s1783_s28   ;;  %s1783_s28 = sphi %s1842_s28, %s19_s28   ;;  %s1779_s27 = sphi %s1840_s27, %s2882_s27   ;;  %s1775_s26 = sphi %s1838_s26, %s2887_s26   ;;  %s1771_s25 = sphi %s1836_s25, %s2880_s25   ;;  %s1767_s24 = sphi %s1834_s24, %s2886_s24   ;;  %s1763_s23 = sphi %s1832_s23, %s2885_s23   ;;  %s1759_s22 = sphi %s1830_s22, %s2884_s22   ;;  %s1755_s21 = sphi %s1828_s21, %s2883_s21  }
   0x6   : > { %s1529_s30 = sadd.s32 4294967294, %s1783_s28   ;;  %s28_s7 = sadd.s32 1, %s1775_s26 }
   0x7   : > { %p29_p0 = scmp.ge.s32.totalorder %s28_s7, 2  ;;  %s31_s8 = sadd.s32 1, %s1779_s27 }
   0x8   : > { %p213_p1 = scmp.ne.s32.totalorder %s1763_s23, %s1759_s22  ;;  %p214_p2 = scmp.eq.s32.totalorder %s1528_s29, 3 }
   0x9   : > { %s2889_s7 = smov (%p29_p0, %s28_s7), 0  ;;  %s2891_s8 = smov (!%p29_p0, %s31_s8), %s1779_s27 }
   0xa   : > { %2865 = sst [smem:[#allocation6_spill]] %s2889_s7  ;;  %s199_s9 = ssub.s32 %s1775_s26, %s2889_s7 }
   0xb   : > { %p1879_p3 = por %p214_p2, %p213_p1  ;;  %p33_p4 = scmp.ge.s32.totalorder %s2891_s8, 2 }
   0xc   : > { %p219_p5 = scmp.ne.s32.totalorder %s1759_s22, %s1755_s21  ;;  %p220_p6 = scmp.eq.s32.totalorder %s1529_s30, 3 }
   0xd   : > { %p1538_p7 = scmp.ge.s32.totalorder %s1783_s28, 1  ;;  %s2893_s8 = smov (%p33_p4, %s2891_s8), 0 }
   0xe   : > { %2867 = sst [smem:[#allocation7_spill]] %s2893_s8  ;;  %p1888_p8 = por %p220_p6, %p219_p5 }
   0xf   : > { %p301_p9 = scmp.lt.s32.totalorder %s1783_s28, 5  ;;  %s198_s12 = ssub.s32 %s1779_s27, %s2893_s8 }
  0x10   : > { %s203_s13 = sadd.s32 1, %s1763_s23  ;;  %s200_s14 = sor.u32 %s199_s9, %s198_s12 }
  0x11   : > { %p302_p10 = pnand %p1538_p7, %p301_p9  ;;  %p201_p11 = scmp.eq.s32.totalorder %s200_s14, 0 }
  0x13   : > { %s1897_s15 = scalar_select %p201_p11, %s1763_s23, %s203_s13  }
  0x14   : > { %305 = sbr.rel (%p302_p10) target bundleno = 688 (0x2b0), region = 44 }
  0x19   : > { %s1900_s16 = sshll.u32 %s1767_s24, 3  ;;  %p363_p12 = scmp.lt.s32.totalorder %s1771_s25, 1  ;;  %v1913_v0 = vld [vmem:[%s2850_s3] ss:$0 sm:$0xff]  ;;  %vm507_vm0 = vcmask 1040384   ;;  %vm602_vm1 = vcmask 1046528  }
  0x1a   : > { %p365_p13 = scmp.lt.s32.totalorder %s1900_s16, 15  ;;  %s1545_s29 = sadd.s32 4294967295, %s1900_s16  ;;  %v1923_v1 = vld [vmem:[%s2851_s4] ss:$0 sm:$0xff]  ;;  %vm691_vm2 = vcmask 1045504   ;;  %vm1092_vm3 = vcmask 31744  }
  0x1b   : > { %s364_s17 = scalar_select %p363_p12, %s1771_s25, 1  ;;  %vm1109_vm4 = vcmask 64512   ;;  %vm1126_vm5 = vcmask 97280   ;;  %vm1143_vm6 = vcmask 130048   ;;  %vm1282_vm7 = vcmask 1043456  }
  0x1c   : > { %s366_s18 = scalar_select %p365_p13, %s1900_s16, 15  ;;  %vm1160_vm8 = vcmask 162816   ;;  %vm1177_vm9 = vcmask 195584   ;;  %vm1194_vm10 = vcmask 228352   ;;  %vm1211_vm11 = vcmask 261120  }
  0x1d   : > { %s1906_s19 = sshll.u32 %s364_s17, 5  ;;  %p375_p0 = scmp.gt.s32.totalorder %s1545_s29, 0  ;;  %vm1233_vm12 = vcmask 293888  }
  0x1e   : > { %s1541_s20 = sshll.u32 %s366_s18, 1  ;;  %p1546_p1 = scmp.lt.s32.totalorder %s1545_s29, 15 }
  0x1f   : > { %s369_s30 = sadd.s32 %s1906_s19, %s1541_s20  ;;  %p463_p2 = scmp.gt.s32.totalorder %s1767_s24, 0 }
  0x20   : > { %s1543_s13 = sshll.u32 %s369_s30, 3  ;;  %s1785_s14 = smov 4  }
  0x21   : > { %s1918_s7 = scalar_lea.vmem %s2847_s0, %s1543_s13  ;;  %s1786_s17 = smov 8  }
  0x22   : > { %v413_v2 = vld [vmem:[%s1918_s7 + $0x20] sm:$0xff]  ;;  %v414_v3 = vld [vmem:[%s1918_s7 + $0x28] sm:$0xff]  ;;  %v411_v4 = vld [vmem:[%s1918_s7 + $0x10] sm:$0xff]  ;;  %s376_s8 = scalar_select %p375_p0, %s1545_s29, 0 }
  0x23   : > { %v432_v5 = vmul.f32 %v1913_v0, %v413_v2  ;;  %v433_v6 = vmul.f32 %v1913_v0, %v414_v3  ;;  %v412_v7 = vld [vmem:[%s1918_s7 + $0x18] sm:$0xff]  ;;  %v430_v8 = vmul.f32 %v1913_v0, %v411_v4  ;;  %v409_v9 = vld [vmem:[%s1918_s7] sm:$0xff]  ;;  %v410_v10 = vld [vmem:[%s1918_s7 + $0x8] sm:$0xff]  ;;  %s1949_s27 = scalar_select %p463_p2, 1, 0 }
  0x24   : > { %v431_v11 = vmul.f32 %v1913_v0, %v412_v7  ;;  %v428_v12 = vmul.f32 %v1913_v0, %v409_v9  ;;  %v429_v13 = vmul.f32 %v1913_v0, %v410_v10  ;;  %v415_v14 = vld [vmem:[%s1918_s7 + $0x30] sm:$0xff]  ;;  %v416_v15 = vld [vmem:[%s1918_s7 + $0x38] sm:$0xff]  ;;  %s2895_s8 = smov (!%p1546_p1, %s376_s8), 15  ;;  %v417_v60 = vld [vmem:[%s1918_s7 + $0x40] sm:$0xff]  ;;  %p466_p5 = scmp.lt.s32.totalorder %s1767_s24, 1 }
  0x25   : > { %v451_v16 = vadd.f32 %v1923_v1, %v432_v5  ;;  %v1943_v17 = vadd.f32 %v1923_v1, %v433_v6  ;;  %v449_v18 = vadd.f32 %v1923_v1, %v430_v8  ;;  %v434_v19 = vmul.f32 %v1913_v0, %v415_v14  ;;  %s1551_s18 = sshll.u32 %s2895_s8, 1  ;;  %s465_s13 = scvt.s32.f32 %s1949_s27  ;;  %v418_v61 = vld [vmem:[%s1918_s7 + $0x48] sm:$0xff] }
  0x26   : > { %v450_v20 = vadd.f32 %v1923_v1, %v431_v11  ;;  %v447_v21 = vadd.f32 %v1923_v1, %v428_v12  ;;  %v448_v22 = vadd.f32 %v1923_v1, %v429_v13  ;;  %v435_v23 = vmul.f32 %v1913_v0, %v416_v15  ;;  %s383_s20 = sadd.s32 %s1551_s18, %s1906_s19  ;;  %v419_v12 = vld [vmem:[%s1918_s7 + $0x50] sm:$0xff]  ;;  %v420_v13 = vld [vmem:[%s1918_s7 + $0x58] sm:$0xff]  ;;  %s1787_s8 = smov 12  }
  0x27   : > { %v517_v24 = vrot.slane %v451_v16, 7  ;;  %v518_v25 = vrot.slane %v1943_v17, 7  ;;  %v514_v26 = vrot.slane %v449_v18, 7  ;;  %v453_v27 = vadd.f32 %v1923_v1, %v434_v19  ;;  %s1553_s29 = sshll.u32 %s383_s20, 3  ;;  %v421_v17 = vld [vmem:[%s1918_s7 + $0x60] sm:$0xff]  ;;  %s1789_s27 = smov 24  }
  0x28   : > { %v515_v28 = vrot.slane %v450_v20, 7  ;;  %v511_v29 = vrot.slane %v447_v21, 7  ;;  %v512_v30 = vrot.slane %v448_v22, 7  ;;  %v454_v31 = vadd.f32 %v1923_v1, %v435_v23  ;;  %s385_s12 = scalar_lea.vmem %s2848_s1, %s1553_s29  ;;  %v422_v20 = vld [vmem:[%s1918_s7 + $0x68] sm:$0xff]  ;;  %s1790_s18 = smov 20  }
  0x29   : > { %v1960_v32 = vsel %vm507_vm0, %v517_v24, %v518_v25  ;;  %v1963_v33 = vsel %vm507_vm0, 0.0, %v517_v24  ;;  %v1966_v34 = vsel %vm507_vm0, 0.0, %v514_v26  ;;  %v520_v35 = vrot.slane %v453_v27, 7  ;;  %v469_v48 = vld [vmem:[%s385_s12] sm:$0xff]  ;;  %v470_v49 = vld [vmem:[%s385_s12 + $0x8] sm:$0xff]  ;;  %s1791_s20 = smov 28  }
  0x2a   : > { %v618_v36 = vrot.slane %v1963_v33, 1  ;;  %v619_v37 = vrot.slane %v1960_v32, 1  ;;  %v1974_v38 = vsel %vm507_vm0, %v514_v26, %v515_v28  ;;  %v613_v39 = vrot.slane %v1966_v34, 1  ;;  %s1792_s29 = smov 32   ;;  %s1590_s12 = sadd.s32 8, %s1900_s16 }
  0x2b   : > { %v614_v40 = vrot.slane %v1974_v38, 1  ;;  %v1979_v41 = vsel %vm507_vm0, %v511_v29, %v512_v30  ;;  %v1982_v42 = vsel %vm507_vm0, 0.0, %v511_v29  ;;  %v521_v43 = vrot.slane %v454_v31, 7  ;;  %p2601_p4 = scmp.lt.s32.totalorder %s1590_s12, 15 }
  0x2c   : > { %v1987_v44 = vsel %vm602_vm1, %v618_v36, %v619_v37  ;;  %v608_v45 = vrot.slane %v1982_v42, 1  ;;  %v609_v46 = vrot.slane %v1979_v41, 1  ;;  %v1992_v47 = vsel %vm507_vm0, %v515_v28, 0.0  ;;  %s467_s30 = scalar_select %p466_p5, 1, 0 }
  0x2d   : > { %655 = vrot.lane.b32.xlu0 %v1987_v44, %s1785_s14  ;;  %v1998_v50 = vsel %vm602_vm1, %v613_v39, %v614_v40  ;;  %v2001_v51 = vsel %vm507_vm0, %v520_v35, %v521_v43  ;;  %v2004_v52 = vsel %vm507_vm0, %v521_v43, 0.0  ;;  %v616_v53 = vrot.slane %v1992_v47, 1  ;;  %s2897_s12 = smov (!%p2601_p4, %s1590_s12), 15 }
  0x2e   : > { %651 = vrot.lane.b32.xlu2 %v1998_v50, %s1785_s14  ;;  %v2010_v54 = vsel %vm602_vm1, %v608_v45, %v609_v46  ;;  %v624_v55 = vrot.slane %v2001_v51, 1  ;;  %v626_v56 = vrot.slane %v2004_v52, 1  ;;  %v2015_v57 = vsel %vm507_vm0, %v512_v30, 0.0  ;;  %s2899_s12 = smov (!%p2601_p4, %s2897_s12), 15 }
  0x2f   : > { %647 = vrot.lane.b32.xlu1 %v2010_v54, %s1785_s14  ;;  %v471_v58 = vmul.f32 %v1913_v0, %v469_v48  ;;  %v472_v59 = vmul.f32 %v1913_v0, %v470_v49  ;;  %v611_v62 = vrot.slane %v2015_v57, 1  ;;  %v475_v63 = vstv %s465_s13  ;;  %s1558_s16 = sshll.u32 %s2899_s12, 1  ;;  %s468_s13 = scvt.s32.f32 %s467_s30 }
  0x30   : > { %v2027_v4 = vsel %vm602_vm1, %v624_v55, %v626_v56  ;;  %v2030_v5 = vsel %vm602_vm1, %v614_v40, %v616_v53  ;;  %v436_v6 = vmul.f32 %v1913_v0, %v417_v60  ;;  %v437_v7 = vmul.f32 %v1913_v0, %v418_v61 }
  0x31   : > { %v473_v2 = vadd.f32 %v1923_v1, %v471_v58  ;;  %v474_v3 = vadd.f32 %v1923_v1, %v472_v59  ;;  %v2035_v10 = vsel %vm507_vm0, 0.0, %v520_v35  ;;  %v2038_v11 = vsel %vm507_vm0, %v518_v25, 0.0 }
  0x32   : > { %v2043_v14 = vsel %vm602_vm1, %v609_v46, %v611_v62  ;;  %v455_v15 = vadd.f32 %v1923_v1, %v436_v6  ;;  %v456_v16 = vadd.f32 %v1923_v1, %v437_v7  ;;  %v623_v21 = vrot.slane %v2035_v10, 1 }
  0x33   : > { %v476_v8 = vmul.f32 %v475_v63, %v473_v2  ;;  %v477_v9 = vmul.f32 %v475_v63, %v474_v3  ;;  %v621_v22 = vrot.slane %v2038_v11, 1  ;;  %v438_v23 = vmul.f32 %v1913_v0, %v419_v12 }
  0x34   : > { %v439_v24 = vmul.f32 %v1913_v0, %v420_v13  ;;  %v523_v27 = vrot.slane %v455_v15, 7  ;;  %v440_v28 = vmul.f32 %v1913_v0, %v421_v17  ;;  %v524_v31 = vrot.slane %v456_v16, 7 }
  0x35   : > { %661 = vrot.lane.b32.xlu0 %v2027_v4, %s1785_s14  ;;  %v508_v18 = vrot.slane %v476_v8, 7  ;;  %v509_v19 = vrot.slane %v477_v9, 7  ;;  %v441_v35 = vmul.f32 %v1913_v0, %v422_v20  ;;  %v2071_v39 = vsel %vm602_vm1, %v623_v21, %v624_v55 }
  0x36   : > { %653 = vrot.lane.b32.xlu2 %v2030_v5, %s1785_s14  ;;  %v2076_v40 = vsel %vm602_vm1, %v619_v37, %v621_v22  ;;  %v457_v45 = vadd.f32 %v1923_v1, %v438_v23  ;;  %v458_v46 = vadd.f32 %v1923_v1, %v439_v24  ;;  %v2082_v48 = vsel %vm507_vm0, %v523_v27, %v524_v31 }
  0x37   : > { %649 = vrot.lane.b32.xlu1 %v2043_v14, %s1785_s14  ;;  %v2060_v25 = vsel %vm507_vm0, %v508_v18, %v509_v19  ;;  %v2063_v26 = vsel %vm507_vm0, 0.0, %v508_v18  ;;  %v576_v43 = vsel %vm507_vm0, %v509_v19, 0.0  ;;  %2869 = vst [vmem:[#allocation8_spill] sm:$0xff] %v2082_v48  ;;  %v2085_v49 = vsel %vm507_vm0, %v524_v31, 0.0 }
  0x38   : > { %v603_v29 = vrot.slane %v2063_v26, 1  ;;  %v604_v30 = vrot.slane %v2060_v25, 1  ;;  %v459_v53 = vadd.f32 %v1923_v1, %v440_v28  ;;  %v460_v55 = vadd.f32 %v1923_v1, %v441_v35 }
  0x39   : > { %v2091_v37 = vsel %vm507_vm0, 0.0, %v523_v27  ;;  %v606_v56 = vrot.slane %v576_v43, 1  ;;  %v629_v58 = vrot.slane %v2082_v48, 1  ;;  %v631_v59 = vrot.slane %v2085_v49, 1 }
  0x3a   : > { %v605_v36 = vsel %vm602_vm1, %v603_v29, %v604_v30  ;;  %v526_v60 = vrot.slane %v457_v45, 7  ;;  %v527_v61 = vrot.slane %v458_v46, 7  ;;  %v628_v62 = vrot.slane %v2091_v37, 1 }
  0x3b   : > { %v529_v63 = vrot.slane %v459_v53, 7  ;;  %v530_v2 = vrot.slane %v460_v55, 7  ;;  %v607_v3 = vsel %vm602_vm1, %v604_v30, %v606_v56  ;;  %v2102_v6 = vsel %vm602_vm1, %v629_v58, %v631_v59 }
  0x3c   : > { %2870 = vst [vmem:[#allocation9_spill] sm:$0xff] %v2102_v6  ;;  %v2105_v7 = vsel %vm507_vm0, %v526_v60, %v527_v61  ;;  %v2108_v8 = vsel %vm507_vm0, 0.0, %v526_v60  ;;  %v2111_v9 = vsel %vm602_vm1, %v628_v62, %v629_v58  ;;  %v2121_v15 = vsel %vm507_vm0, %v527_v61, 0.0 }
  0x3d   : > { %643 = vrot.lane.b32.xlu0 %v605_v36, %s1785_s14  ;;  %v2114_v12 = vsel %vm507_vm0, %v529_v63, %v530_v2  ;;  %v2117_v13 = vsel %vm507_vm0, 0.0, %v529_v63  ;;  %v633_v16 = vrot.slane %v2108_v8, 1  ;;  %v634_v17 = vrot.slane %v2105_v7, 1 }
  0x3e   : > { %659 = vrot.lane.b32.xlu2 %v2071_v39, %s1785_s14  ;;  %2871 = vst [vmem:[#allocation10_spill] sm:$0xff] %v2117_v13  ;;  %v638_v18 = vrot.slane %v2117_v13, 1  ;;  %v639_v19 = vrot.slane %v2114_v12, 1  ;;  %v636_v20 = vrot.slane %v2121_v15, 1  ;;  %v2139_v23 = vsel %vm507_vm0, %v530_v2, 0.0 }
  0x3f   : > { %657 = vrot.lane.b32.xlu1 %v2076_v40, %s1785_s14  ;;  %v2133_v21 = vsel %vm602_vm1, %v633_v16, %v634_v17  ;;  %v641_v27 = vrot.slane %v2139_v23, 1  ;;  %v693_v28 = vrot.slane %v2060_v25, 2  ;;  %v695_v29 = vrot.slane %v576_v43, 2 }
  0x40   : > { %v2136_v22 = vsel %vm602_vm1, %v638_v18, %v639_v19  ;;  %v2142_v24 = vsel %vm602_vm1, %v634_v17, %v636_v20  ;;  %v692_v30 = vrot.slane %v2063_v26, 2  ;;  %v697_v45 = vrot.slane %v1982_v42, 2 }
  0x41   : > { %v2154_v31 = vsel %vm602_vm1, %v639_v19, %v641_v27  ;;  %v696_v35 = vsel %vm691_vm2, %v693_v28, %v695_v29  ;;  %v698_v43 = vrot.slane %v1979_v41, 2  ;;  %v702_v46 = vrot.slane %v1966_v34, 2 }
  0x42   : > { %v694_v36 = vsel %vm691_vm2, %v692_v30, %v693_v28  ;;  %v703_v53 = vrot.slane %v1974_v38, 2  ;;  %v700_v55 = vrot.slane %v2015_v57, 2  ;;  %v705_v60 = vrot.slane %v1992_v47, 2 }
  0x43   : > { %v2168_v56 = vsel %vm691_vm2, %v697_v45, %v698_v43  ;;  %v708_v57 = vrot.slane %v1960_v32, 2  ;;  %v710_v61 = vrot.slane %v2038_v11, 2  ;;  %v707_v62 = vrot.slane %v1963_v33, 2 }
  0x44   : > { %v2171_v58 = vsel %vm691_vm2, %v702_v46, %v703_v53  ;;  %v2174_v59 = vsel %vm691_vm2, %v698_v43, %v700_v55  ;;  %v2187_v63 = vsel %vm691_vm2, %v703_v53, %v705_v60  ;;  %v712_v47 = vrot.slane %v2035_v10, 2  ;;  %v423_v60 = vld [vmem:[%s1918_s7 + $0x70] sm:$0xff] }
  0x45   : > { %645 = vrot.lane.b32.xlu0 %v607_v3, %s1785_s14  ;;  %v2190_v2 = vsel %vm691_vm2, %v708_v57, %v710_v61  ;;  %v2193_v3 = vsel %vm691_vm2, %v707_v62, %v708_v57  ;;  %v713_v11 = vrot.slane %v2001_v51, 2  ;;  %v717_v16 = vrot.slane %v2091_v37, 2  ;;  %v424_v57 = vld [vmem:[%s1918_s7 + $0x78] sm:$0xff]  ;;  %s1788_s7 = smov 16  }
  0x46   : > { %665 = vrot.lane.b32.xlu2 %v2102_v6, %s1785_s14  ;;  %v718_v17 = vrot.slane %v2082_v48, 2  ;;  %v715_v18 = vrot.slane %v2004_v52, 2  ;;  %v720_v28 = vrot.slane %v2085_v49, 2  ;;  %v723_v52 = vrot.slane %v2105_v7, 2 }
  0x47   : > { %663 = vrot.lane.b32.xlu1 %v2111_v9, %s1785_s14  ;;  %v2207_v19 = vsel %vm691_vm2, %v712_v47, %v713_v11  ;;  %v725_v29 = vrot.slane %v2121_v15, 2  ;;  %v722_v30 = vrot.slane %v2108_v8, 2  ;;  %v727_v49 = vrot.slane %v2117_v13, 2 }
  0x48   : > { %v2210_v20 = vsel %vm691_vm2, %v717_v16, %v718_v17  ;;  %v2213_v27 = vsel %vm691_vm2, %v713_v11, %v715_v18  ;;  %v728_v15 = vrot.slane %v2114_v12, 2  ;;  %v730_v43 = vrot.slane %v2139_v23, 2 }
  0x49   : > { %v2232_v45 = vsel %vm691_vm2, %v722_v30, %v723_v52  ;;  %v442_v61 = vmul.f32 %v1913_v0, %v423_v60  ;;  %v443_v62 = vmul.f32 %v1913_v0, %v424_v57 }
  0x4a   : > { %v2244_v46 = vsel %vm691_vm2, %v727_v49, %v728_v15  ;;  %v2247_v53 = vsel %vm691_vm2, %v728_v15, %v730_v43 }
  0x4b   : > { %2872 = vst [vmem:[#allocation11_spill] sm:$0xff] %v2247_v53  ;;  %v461_v11 = vadd.f32 %v1923_v1, %v442_v61  ;;  %v2283_v16 = vadd.f32 %v1923_v1, %v443_v62 }
  0x4d   : > { %667 = vrot.lane.b32.xlu0 %v2133_v21, %s1785_s14  ;;  %v532_v18 = vrot.slane %v461_v11, 7  ;;  %v533_v0 = vrot.slane %v2283_v16, 7 }
  0x4e   : > { %671 = vrot.lane.b32.xlu2 %v2136_v22, %s1785_s14 }
  0x4f   : > { %669 = vrot.lane.b32.xlu1 %v2142_v24, %s1785_s14  ;;  %v2301_v30 = vsel %vm507_vm0, %v532_v18, %v533_v0  ;;  %v2304_v49 = vsel %vm507_vm0, 0.0, %v532_v18 }
  0x50   : > { %2873 = vst [vmem:[#allocation12_spill] sm:$0xff] %v2304_v49 }
  0x55   : > { %673 = vrot.lane.b32.xlu0 %v2154_v31, %s1785_s14  ;;  %s400_s14 = sadd.s32 %s1558_s16, %s1906_s19 }
  0x56   : > { %734 = vrot.lane.b32.xlu2 %v696_v35, %s1786_s17  ;;  %v2226_v35 = vsel %vm691_vm2, %v718_v17, %v720_v28 }
  0x57   : > { %732 = vrot.lane.b32.xlu1 %v694_v36, %s1786_s17  ;;  %v2229_v36 = vsel %vm691_vm2, %v723_v52, %v725_v29 }
  0x5d   : > { %736 = vrot.lane.b32.xlu0 %v2168_v56, %s1786_s17 }
  0x5e   : > { %740 = vrot.lane.b32.xlu2 %v2171_v58, %s1786_s17 }
  0x5f   : > { %738 = vrot.lane.b32.xlu1 %v2174_v59, %s1786_s17 }
  0x65   : > { %742 = vrot.lane.b32.xlu0 %v2187_v63, %s1786_s17 }
  0x66   : > { %746 = vrot.lane.b32.xlu2 %v2190_v2, %s1786_s17 }
  0x67   : > { %744 = vrot.lane.b32.xlu1 %v2193_v3, %s1786_s17 }
  0x6d   : > { %748 = vrot.lane.b32.xlu0 %v2207_v19, %s1786_s17 }
  0x6e   : > { %752 = vrot.lane.b32.xlu2 %v2210_v20, %s1786_s17 }
  0x6f   : > { %750 = vrot.lane.b32.xlu1 %v2213_v27, %s1786_s17 }
  0x75   : > { %754 = vrot.lane.b32.xlu0 %v2226_v35, %s1786_s17 }
  0x76   : > { %758 = vrot.lane.b32.xlu2 %v2229_v36, %s1786_s17 }
  0x77   : > { %756 = vrot.lane.b32.xlu1 %v2232_v45, %s1786_s17 }
  0x7d   : > { %760 = vrot.lane.b32.xlu0 %v2244_v46, %s1786_s17 }
  0x7e   : > { %781 = vrot.lane.b32.xlu2 %v1982_v42, %s1787_s8 }
  0x7f   : > { %762 = vrot.lane.b32.xlu1 %v2247_v53, %s1786_s17  ;;  %s1560_s17 = sshll.u32 %s400_s14, 3 }
  0x85   : > { %783 = vrot.lane.b32.xlu0 %v1979_v41, %s1787_s8 }
  0x86   : > { %787 = vrot.lane.b32.xlu2 %v1974_v38, %s1787_s8 }
  0x87   : > { %785 = vrot.lane.b32.xlu1 %v1966_v34, %s1787_s8 }
  0x88   : > { %v652_v23 = vpop.permute.xlu2 %651 }
  0x8d   : > { %789 = vrot.lane.b32.xlu0 %v1963_v33, %s1787_s8 }
  0x8e   : > { %793 = vrot.lane.b32.xlu2 %v2035_v10, %s1787_s8 }
  0x8f   : > { %791 = vrot.lane.b32.xlu1 %v1960_v32, %s1787_s8 }
  0x90   : > { %v2267_v55 = vpop.permute.xlu2 %653 }
  0x95   : > { %795 = vrot.lane.b32.xlu0 %v2001_v51, %s1787_s8 }
  0x96   : > { %799 = vrot.lane.b32.xlu2 %v2082_v48, %s1787_s8 }
  0x97   : > { %797 = vrot.lane.b32.xlu1 %v2091_v37, %s1787_s8 }
  0x98   : > { %v2279_v47 = vpop.permute.xlu2 %659 }
  0x9d   : > { %801 = vrot.lane.b32.xlu0 %v2108_v8, %s1787_s8 }
  0x9e   : > { %805 = vrot.lane.b32.xlu2 %v2117_v13, %s1787_s8 }
  0x9f   : > { %803 = vrot.lane.b32.xlu1 %v2105_v7, %s1787_s8  ;;  %v656_v17 = vpop.permute.xlu0 %655 }
  0xa0   : > { %v2294_v28 = vsel %vm1092_vm3, %v1963_v33, %v656_v17  ;;  %v666_v1 = vpop.permute.xlu2 %665 }
  0xa1   : > { %v2298_v52 = vsel %vm1092_vm3, %v2082_v48, %v666_v1  ;;  %v648_v29 = vpop.permute.xlu1 %647 }
  0xa5   : > { %807 = vrot.lane.b32.xlu0 %v2114_v12, %s1787_s8 }
  0xa6   : > { %811 = vrot.lane.b32.xlu2 %v2301_v30, %s1787_s8 }
  0xa7   : > { %809 = vrot.lane.b32.xlu1 %v2304_v49, %s1787_s8  ;;  %v662_v15 = vpop.permute.xlu0 %661 }
  0xa8   : > { %v2314_v43 = vsel %vm1092_vm3, %v2001_v51, %v662_v15  ;;  %v672_v60 = vpop.permute.xlu2 %671 }
  0xa9   : > { %v2318_v57 = vsel %vm1092_vm3, %v2117_v13, %v672_v60  ;;  %v650_v61 = vpop.permute.xlu1 %649 }
  0xaa   : > { %v1096_v62 = vsel %vm1092_vm3, %v1979_v41, %v650_v61 }
  0xad   : > { %835 = vrot.lane.b32.xlu0 %v2010_v54, %s1788_s7  ;;  %v1097_v54 = vsel %vm1092_vm3, %v1966_v34, %v652_v23 }
  0xae   : > { %839 = vrot.lane.b32.xlu2 %v1998_v50, %s1788_s7 }
  0xaf   : > { %837 = vrot.lane.b32.xlu1 %v2043_v14, %s1788_s7  ;;  %v644_v11 = vpop.permute.xlu0 %643 }
  0xb0   : > { %v735_v16 = vpop.permute.xlu2 %734 }
  0xb1   : > { %v658_v17 = vpop.permute.xlu1 %657 }
  0xb2   : > { %v1100_v18 = vsel %vm1092_vm3, %v1960_v32, %v658_v17 }
  0xb5   : > { %841 = vrot.lane.b32.xlu0 %v2030_v5, %s1788_s7 }
  0xb6   : > { %845 = vrot.lane.b32.xlu2 %v2076_v40, %s1788_s7 }
  0xb7   : > { %843 = vrot.lane.b32.xlu1 %v1987_v44, %s1788_s7  ;;  %v646_v41 = vpop.permute.xlu0 %645 }
  0xb8   : > { %v1094_v14 = vsel %vm1092_vm3, %v2060_v25, %v646_v41  ;;  %v741_v1 = vpop.permute.xlu2 %740 }
  0xb9   : > { %v2341_v15 = vsel %vm1109_vm4, %v1097_v54, %v741_v1  ;;  %v664_v60 = vpop.permute.xlu1 %663  ;;  %v2344_v61 = vsel %vm1109_vm4, %v1094_v14, %v735_v16 }
  0xba   : > { %v1103_v17 = vsel %vm1092_vm3, %v2091_v37, %v664_v60  ;;  %v830_v60 = vrot.slane %v2304_v49, 1  ;;  %v2385_v49 = vsel %vm507_vm0, %v533_v0, 0.0 }
  0xbd   : > { %847 = vrot.lane.b32.xlu0 %v2071_v39, %s1788_s7 }
  0xbe   : > { %851 = vrot.lane.b32.xlu2 %v2111_v9, %s1788_s7 }
  0xbf   : > { %849 = vrot.lane.b32.xlu1 %v2027_v4, %s1788_s7  ;;  %v668_v25 = vpop.permute.xlu0 %667 }
  0xc0   : > { %v2356_v23 = vsel %vm1092_vm3, %v2108_v8, %v668_v25  ;;  %v747_v41 = vpop.permute.xlu2 %746  ;;  %v831_v25 = vrot.slane %v2301_v30, 1 }
  0xc1   : > { %v2359_v16 = vsel %vm1109_vm4, %v1100_v18, %v747_v41  ;;  %v670_v54 = vpop.permute.xlu1 %669 }
  0xc2   : > { %v1106_v14 = vsel %vm1092_vm3, %v2105_v7, %v670_v54  ;;  %v1093_v54 = vsel %vm1092_vm3, %v2063_v26, %v644_v11  ;;  %v2382_v13 = vsel %vm602_vm1, %v830_v60, %v831_v25  ;;  %v833_v26 = vrot.slane %v2385_v49, 1 }
  0xc3   : > { %v1095_v11 = vsel %vm1092_vm3, %v1982_v42, %v648_v29  ;;  %v1098_v42 = vsel %vm1092_vm3, %v1974_v38, %v2267_v55 }
  0xc5   : > { %853 = vrot.lane.b32.xlu0 %v2102_v6, %s1788_s7 }
  0xc6   : > { %857 = vrot.lane.b32.xlu2 %v2142_v24, %s1788_s7 }
  0xc7   : > { %855 = vrot.lane.b32.xlu1 %v2133_v21, %s1788_s7  ;;  %v674_v1 = vpop.permute.xlu0 %673 }
  0xc8   : > { %v2373_v18 = vsel %vm1092_vm3, %v2114_v12, %v674_v1  ;;  %v753_v41 = vpop.permute.xlu2 %752 }
  0xc9   : > { %v2378_v6 = vsel %vm1109_vm4, %v1103_v17, %v753_v41  ;;  %v733_v53 = vpop.permute.xlu1 %732 }
  0xca   : > { %v1110_v48 = vsel %vm1109_vm4, %v1093_v54, %v733_v53  ;;  %v2402_v54 = vsel %vm602_vm1, %v831_v25, %v833_v26 }
  0xcd   : > { %859 = vrot.lane.b32.xlu0 %v2136_v22, %s1788_s7 }
  0xce   : > { %863 = vrot.lane.b32.xlu2 %v2382_v13, %s1788_s7 }
  0xcf   : > { %861 = vrot.lane.b32.xlu1 %v2154_v31, %s1788_s7  ;;  %v737_v53 = vpop.permute.xlu0 %736 }
  0xd0   : > { %v759_v17 = vpop.permute.xlu2 %758  ;;  %v1112_v1 = vsel %vm1109_vm4, %v1095_v11, %v737_v53 }
  0xd1   : > { %v2398_v0 = vsel %vm1109_vm4, %v1106_v14, %v759_v17  ;;  %v739_v60 = vpop.permute.xlu1 %738 }
  0xd2   : > { %v1113_v41 = vsel %vm1109_vm4, %v1096_v62, %v739_v60 }
  0xd5   : > { %865 = vrot.lane.b32.xlu0 %v2402_v54, %s1788_s7  ;;  %s402_s7 = scalar_lea.vmem %s2849_s2, %s1560_s17 }
  0xd6   : > { %937 = vrot.lane.b32.xlu2 %v1966_v34, %s1789_s27 }
  0xd7   : > { %888 = vrot.lane.b32.xlu1 %v2168_v56, %s1790_s18  ;;  %v743_v29 = vpop.permute.xlu0 %742  ;;  %v1101_v56 = vsel %vm1092_vm3, %v2035_v10, %v2279_v47 }
  0xd8   : > { %v782_v62 = vpop.permute.xlu2 %781  ;;  %v1115_v14 = vsel %vm1109_vm4, %v1098_v42, %v743_v29 }
  0xd9   : > { %v2415_v25 = vsel %vm1126_vm5, %v1110_v48, %v782_v62  ;;  %v745_v26 = vpop.permute.xlu1 %744 }
  0xda   : > { %v1116_v34 = vsel %vm1109_vm4, %v2294_v28, %v745_v26 }
  0xdd   : > { %991 = vrot.lane.b32.xlu0 %v1998_v50, %s1791_s20 }
  0xde   : > { %890 = vrot.lane.b32.xlu2 %v2174_v59, %s1790_s18 }
  0xdf   : > { %1044 = vrot.lane.b32.xlu1 %v2171_v58, %s1792_s29  ;;  %v749_v48 = vpop.permute.xlu0 %748 }
  0xe0   : > { %v788_v55 = vpop.permute.xlu2 %787  ;;  %v1118_v11 = vsel %vm1109_vm4, %v1101_v56, %v749_v48 }
  0xe1   : > { %v2430_v28 = vsel %vm1126_vm5, %v1113_v41, %v788_v55  ;;  %v751_v53 = vpop.permute.xlu1 %750 }
  0xe2   : > { %v1119_v50 = vsel %vm1109_vm4, %v2314_v43, %v751_v53 }
  0xe5   : > { %939 = vrot.lane.b32.xlu0 %v1974_v38, %s1789_s27 }
  0xe6   : > { %1046 = vrot.lane.b32.xlu2 %v2187_v63, %s1792_s29 }
  0xe7   : > { %993 = vrot.lane.b32.xlu1 %v2030_v5, %s1791_s20  ;;  %v755_v59 = vpop.permute.xlu0 %754 }
  0xe8   : > { %v794_v47 = vpop.permute.xlu2 %793  ;;  %v1121_v17 = vsel %vm1109_vm4, %v2298_v52, %v755_v59 }
  0xe9   : > { %v2443_v60 = vsel %vm1126_vm5, %v1116_v34, %v794_v47  ;;  %v757_v41 = vpop.permute.xlu1 %756 }
  0xea   : > { %v1122_v43 = vsel %vm1109_vm4, %v2356_v23, %v757_v41 }
  0xed   : > { %896 = vrot.lane.b32.xlu0 %v2193_v3, %s1790_s18 }
  0xee   : > { %999 = vrot.lane.b32.xlu2 %v2071_v39, %s1791_s20 }
  0xef   : > { %945 = vrot.lane.b32.xlu1 %v2035_v10, %s1789_s27  ;;  %v761_v38 = vpop.permute.xlu0 %760 }
  0xf0   : > { %v800_v5 = vpop.permute.xlu2 %799  ;;  %v1124_v52 = vsel %vm1109_vm4, %v2318_v57, %v761_v38 }
  0xf1   : > { %v2456_v42 = vsel %vm1126_vm5, %v1119_v50, %v800_v5  ;;  %v763_v29 = vpop.permute.xlu1 %762 }
  0xf2   : > { %v1125_v23 = vsel %vm1109_vm4, %v2373_v18, %v763_v29 }
  0xf5   : > { %1052 = vrot.lane.b32.xlu0 %v2207_v19, %s1792_s29 }
  0xf6   : > { %941 = vrot.lane.b32.xlu2 %v1963_v33, %s1789_s27 }
  0xf7   : > { %892 = vrot.lane.b32.xlu1 %v2171_v58, %s1790_s18  ;;  %v784_v10 = vpop.permute.xlu0 %783 }
  0xf8   : > { %v806_v39 = vpop.permute.xlu2 %805  ;;  %v2468_v57 = vsel %vm1126_vm5, %v2344_v61, %v784_v10  ;;  %v1228_v10 = vld [vmem:[%s2852_s5] sm:$0xff] }
  0xf9   : > { %v2471_v62 = vsel %vm1126_vm5, %v1122_v43, %v806_v39  ;;  %v786_v26 = vpop.permute.xlu1 %785 }
  0xfa   : > { %v1129_v18 = vsel %vm1126_vm5, %v1112_v1, %v786_v26 }
  0xfd   : > { %904 = vrot.lane.b32.xlu0 %v2210_v20, %s1790_s18 }
  0xfe   : > { %953 = vrot.lane.b32.xlu2 %v2108_v8, %s1789_s27 }
  0xff   : > { %995 = vrot.lane.b32.xlu1 %v1987_v44, %s1791_s20  ;;  %v790_v33 = vpop.permute.xlu0 %789 }
 0x100   : > { %v812_v58 = vpop.permute.xlu2 %811  ;;  %v2482_v61 = vsel %vm1126_vm5, %v2341_v15, %v790_v33 }
 0x101   : > { %v2485_v34 = vsel %vm1126_vm5, %v1125_v23, %v812_v58  ;;  %v792_v56 = vpop.permute.xlu1 %791 }
 0x102   : > { %v1132_v1 = vsel %vm1126_vm5, %v1115_v14, %v792_v56  ;;  %v884_v56 = vrot.slane %v2301_v30, 2 }
 0x105   : > { %1048 = vrot.lane.b32.xlu0 %v2193_v3, %s1792_s29 }
 0x106   : > { %1007 = vrot.lane.b32.xlu2 %v2133_v21, %s1791_s20 }
 0x107   : > { %898 = vrot.lane.b32.xlu1 %v2190_v2, %s1790_s18  ;;  %v796_v44 = vpop.permute.xlu0 %795 }
 0x108   : > { %v840_v8 = vpop.permute.xlu2 %839  ;;  %v1134_v15 = vsel %vm1126_vm5, %v2359_v16, %v796_v44 }
 0x109   : > { %v2497_v48 = vsel %vm1143_vm6, %v1129_v18, %v840_v8  ;;  %v798_v55 = vpop.permute.xlu1 %797 }
 0x10a   : > { %v1135_v14 = vsel %vm1126_vm5, %v1118_v11, %v798_v55 }
 0x10d   : > { %947 = vrot.lane.b32.xlu0 %v2001_v51, %s1789_s27 }
 0x10e   : > { %1001 = vrot.lane.b32.xlu2 %v2027_v4, %s1791_s20 }
 0x10f   : > { %1060 = vrot.lane.b32.xlu1 %v2232_v45, %s1792_s29  ;;  %v802_v21 = vpop.permute.xlu0 %801 }
 0x110   : > { %v846_v3 = vpop.permute.xlu2 %845  ;;  %v2508_v16 = vsel %vm1126_vm5, %v2378_v6, %v802_v21 }
 0x111   : > { %v2511_v53 = vsel %vm1143_vm6, %v1132_v1, %v846_v3  ;;  %v804_v50 = vpop.permute.xlu1 %803 }
 0x112   : > { %v1138_v11 = vsel %vm1126_vm5, %v1121_v17, %v804_v50 }
 0x115   : > { %1054 = vrot.lane.b32.xlu0 %v2213_v27, %s1792_s29 }
 0x116   : > { %943 = vrot.lane.b32.xlu2 %v1960_v32, %s1789_s27 }
 0x117   : > { %894 = vrot.lane.b32.xlu1 %v2187_v63, %s1790_s18  ;;  %v808_v51 = vpop.permute.xlu0 %807 }
 0x118   : > { %v852_v4 = vpop.permute.xlu2 %851  ;;  %v2522_v6 = vsel %vm1126_vm5, %v2398_v0, %v808_v51 }
 0x119   : > { %v2525_v59 = vsel %vm1143_vm6, %v1135_v14, %v852_v4  ;;  %v810_v47 = vpop.permute.xlu1 %809 }
 0x11a   : > { %v1141_v17 = vsel %vm1126_vm5, %v1124_v52, %v810_v47  ;;  %v1229_v52 = vld [vmem:[%s2852_s5 + $0x8] sm:$0xff] }
 0x11b   : > { %v479_v47 = vld [vmem:[%s402_s7 + $0x8] sm:$0xff] }
 0x11d   : > { %906 = vrot.lane.b32.xlu0 %v2226_v35, %s1790_s18 }
 0x11e   : > { %955 = vrot.lane.b32.xlu2 %v2105_v7, %s1789_s27 }
 0x11f   : > { %997 = vrot.lane.b32.xlu1 %v2076_v40, %s1791_s20  ;;  %v2534_v32 = vpop.permute.xlu0 %835 }
 0x120   : > { %v858_v63 = vpop.permute.xlu2 %857  ;;  %v1144_v3 = vsel %vm1143_vm6, %v2415_v25, %v2534_v32  ;;  %v1687_v32 = vld [vmem:[%s2850_s3] ss:$0 sm:$0xff] }
 0x121   : > { %v2537_v0 = vsel %vm1143_vm6, %v1138_v11, %v858_v63  ;;  %v2539_v41 = vpop.permute.xlu1 %837 }
 0x125   : > { %1050 = vrot.lane.b32.xlu0 %v2190_v2, %s1792_s29  ;;  %v1232_v2 = vld [vmem:[%s2852_s5 + $0x20] sm:$0xf] }
 0x126   : > { %1009 = vrot.lane.b32.xlu2 %v2142_v24, %s1791_s20  ;;  %v1231_v24 = vld [vmem:[%s2852_s5 + $0x18] sm:$0xff]  ;;  %1561 = vmatpush.msk.msra.mxu0 %vm1282_vm7, %v1232_v2 }
 0x127   : > { %900 = vrot.lane.b32.xlu1 %v2207_v19, %s1790_s18  ;;  %v842_v7 = vpop.permute.xlu0 %841  ;;  %1591 = vmatpush.msk.msra.mxu1 %vm1282_vm7, %v1232_v2  ;;  %v1230_v19 = vld [vmem:[%s2852_s5 + $0x10] sm:$0xff] }
 0x128   : > { %v864_v43 = vpop.permute.xlu2 %863  ;;  %v2549_v40 = vsel %vm1143_vm6, %v2430_v28, %v842_v7  ;;  %1592 = vmatpush.msk.msra.mxu2 %vm1282_vm7, %v1232_v2  ;;  %1593 = vmatpush.msk.msra.mxu3 %vm1282_vm7, %v1232_v2 }
 0x129   : > { %v2552_v38 = vsel %vm1143_vm6, %v1141_v17, %v864_v43  ;;  %v2554_v5 = vpop.permute.xlu1 %843  ;;  %1298 = vmatpush.msra.mxu0 %v1231_v24  ;;  %1594 = vmatpush.msra.mxu1 %v1231_v24  ;;  %v1145_v17 = vsel %vm1143_vm6, %v2468_v57, %v2539_v41  ;;  %v886_v57 = vrot.slane %v2385_v49, 2  ;;  %v481_v41 = vmul.f32 %v1687_v32, %v479_v47 }
 0x12a   : > { %1595 = vmatpush.msra.mxu2 %v1231_v24  ;;  %1596 = vmatpush.msra.mxu3 %v1231_v24 }
 0x12b   : > { %1299 = vmatpush.msra.mxu0 %v1230_v19  ;;  %1597 = vmatpush.msra.mxu1 %v1230_v19 }
 0x12c   : > { %1598 = vmatpush.msra.mxu2 %v1230_v19  ;;  %1599 = vmatpush.msra.mxu3 %v1230_v19 }
 0x12d   : > { %949 = vrot.lane.b32.xlu0 %v2091_v37, %s1789_s27  ;;  %1300 = vmatpush.msra.mxu0 %v1229_v52 }
 0x12e   : > { %912 = vrot.lane.b32.xlu2 %v2244_v46, %s1790_s18  ;;  %1600 = vmatpush.msra.mxu1 %v1229_v52 }
 0x12f   : > { %1062 = vrot.lane.b32.xlu1 %v2229_v36, %s1792_s29  ;;  %v848_v28 = vpop.permute.xlu0 %847  ;;  %1301 = vmatpush.msra.mxu0 %v1228_v10 }
 0x130   : > { %v938_v29 = vpop.permute.xlu2 %937  ;;  %v2576_v23 = vsel %vm1143_vm6, %v2443_v60, %v848_v28  ;;  %1603 = vmatpush.msra.mxu1 %v1228_v10  ;;  %1601 = vmatpush.msra.mxu2 %v1229_v52  ;;  %v2874_v60 = vld [vmem:[#allocation12_spill] sm:$0xff]  ;;  %v1688_v28 = vld [vmem:[%s2851_s4] ss:$0 sm:$0xff] }
 0x131   : > { %v850_v37 = vpop.permute.xlu1 %849  ;;  %1602 = vmatpush.msra.mxu3 %v1229_v52  ;;  %v883_v58 = vrot.slane %v2874_v60, 2 }
 0x132   : > { %v2582_v39 = vsel %vm1143_vm6, %v1134_v15, %v850_v37  ;;  %1604 = vmatpush.msra.mxu2 %v1228_v10  ;;  %v484_v37 = vstv %s468_s13 }
 0x133   : > { %1605 = vmatpush.msra.mxu3 %v1228_v10  ;;  %v887_v10 = vsel %vm691_vm2, %v884_v56, %v886_v57 }
 0x135   : > { %1003 = vrot.lane.b32.xlu0 %v2111_v9, %s1791_s20 }
 0x136   : > { %1056 = vrot.lane.b32.xlu2 %v2210_v20, %s1792_s29 }
 0x137   : > { %961 = vrot.lane.b32.xlu1 %v2874_v60, %s1789_s27  ;;  %v854_v26 = vpop.permute.xlu0 %853  ;;  %v483_v60 = vadd.f32 %v1688_v28, %v481_v41 }
 0x138   : > { %v891_v18 = vpop.permute.xlu2 %890  ;;  %v2592_v33 = vsel %vm1143_vm6, %v2456_v42, %v854_v26  ;;  %v2608_v42 = vsel %vm691_vm2, %v883_v58, %v884_v56 }
 0x139   : > { %v856_v9 = vpop.permute.xlu1 %855  ;;  %v1162_v7 = vsel %vm1160_vm8, %v1145_v17, %v891_v18  ;;  %v1148_v18 = vsel %vm1143_vm6, %v2482_v61, %v2554_v5  ;;  %v486_v58 = vmul.f32 %v484_v37, %v483_v60 }
 0x13a   : > { %v2599_v20 = vsel %vm1143_vm6, %v2508_v16, %v856_v9  ;;  %v2878_v16 = vld [vmem:[#allocation11_spill] sm:$0xff] }
 0x13d   : > { %1015 = vrot.lane.b32.xlu0 %v2382_v13, %s1791_s20  ;;  %v2876_v13 = vld [vmem:[#allocation10_spill] sm:$0xff] }
 0x13e   : > { %908 = vrot.lane.b32.xlu2 %v2232_v45, %s1790_s18 }
 0x13f   : > { %1068 = vrot.lane.b32.xlu1 %v2608_v42, %s1792_s29  ;;  %v860_v1 = vpop.permute.xlu0 %859 }
 0x140   : > { %v1047_v44 = vpop.permute.xlu2 %1046  ;;  %v2620_v8 = vsel %vm1143_vm6, %v2471_v62, %v860_v1 }
 0x141   : > { %v862_v15 = vpop.permute.xlu1 %861 }
 0x142   : > { %v2624_v55 = vsel %vm1143_vm6, %v2522_v6, %v862_v15  ;;  %v2879_v6 = vld [vmem:[#allocation9_spill] sm:$0xff] }
 0x145   : > { %957 = vrot.lane.b32.xlu0 %v2876_v13, %s1789_s27 }
 0x146   : > { %1011 = vrot.lane.b32.xlu2 %v2136_v22, %s1791_s20 }
 0x147   : > { %902 = vrot.lane.b32.xlu1 %v2213_v27, %s1790_s18  ;;  %v866_v45 = vpop.permute.xlu0 %865  ;;  %v2877_v27 = vld [vmem:[#allocation8_spill] sm:$0xff] }
 0x148   : > { %v2634_v62 = vpop.permute.xlu2 %999  ;;  %v2638_v14 = vsel %vm1143_vm6, %v2485_v34, %v866_v45 }
 0x149   : > { %v889_v21 = vpop.permute.xlu1 %888 }
 0x14a   : > { %v1161_v22 = vsel %vm1160_vm8, %v1144_v3, %v889_v21 }
 0x14b   : > { %v1178_v50 = vsel %vm1177_vm9, %v1161_v22, %v938_v29 }
 0x14d   : > { %951 = vrot.lane.b32.xlu0 %v2877_v27, %s1789_s27 }
 0x14e   : > { %914 = vrot.lane.b32.xlu2 %v2878_v16, %s1790_s18 }
 0x14f   : > { %1064 = vrot.lane.b32.xlu1 %v2244_v46, %s1792_s29  ;;  %v992_v34 = vpop.permute.xlu0 %991  ;;  %v478_v46 = vld [vmem:[%s402_s7] sm:$0xff] }
 0x150   : > { %v2653_v25 = vpop.permute.xlu2 %941  ;;  %v1195_v11 = vsel %vm1194_vm10, %v1178_v50, %v992_v34  ;;  %v480_v63 = vmul.f32 %v1687_v32, %v478_v46 }
 0x151   : > { %v1045_v51 = vpop.permute.xlu1 %1044 }
 0x152   : > { %v1212_v4 = vsel %vm1211_vm11, %v1195_v11, %v1045_v51  ;;  %v482_v52 = vadd.f32 %v1688_v28, %v480_v63 }
 0x153   : > { %1562 = vmatmul.msk.f32.vlgmr.msra.gmra.mxu0 %vm1233_vm12, %v1212_v4 }
 0x154   : > { %v485_v49 = vmul.f32 %v484_v37, %v482_v52 }
 0x155   : > { %1005 = vrot.lane.b32.xlu0 %v2879_v6, %s1791_s20 }
 0x156   : > { %1058 = vrot.lane.b32.xlu2 %v2226_v35, %s1792_s29  ;;  %v535_v1 = vrot.slane %v485_v49, 7 }
 0x157   : > { %963 = vrot.lane.b32.xlu1 %v2301_v30, %s1789_s27  ;;  %v940_v43 = vpop.permute.xlu0 %939 }
 0x158   : > { %v2674_v2 = vpop.permute.xlu2 %953  ;;  %v1179_v24 = vsel %vm1177_vm9, %v1162_v7, %v940_v43 }
 0x159   : > { %v994_v35 = vpop.permute.xlu1 %993 }
 0x15a   : > { %v1196_v19 = vsel %vm1194_vm10, %v1179_v24, %v994_v35 }
 0x15b   : > { %v1213_v29 = vsel %vm1211_vm11, %v1196_v19, %v1047_v44 }
 0x15c   : > { %1563 = vmatmul.msk.f32.gmra.mxu0 %vm1233_vm12, %v1213_v29 }
 0x15d   : > { %1017 = vrot.lane.b32.xlu0 %v2402_v54, %s1791_s20  ;;  %v536_v54 = vrot.slane %v486_v58, 7 }
 0x15e   : > { %910 = vrot.lane.b32.xlu2 %v2229_v36, %s1790_s18  ;;  %v575_v36 = vsel %vm507_vm0, 0.0, %v535_v1 }
 0x15f   : > { %1070 = vrot.lane.b32.xlu1 %v887_v10, %s1792_s29  ;;  %v897_v26 = vpop.permute.xlu0 %896  ;;  %v986_v15 = vrot.slane %v575_v36, 1  ;;  %v537_v45 = vsel %vm507_vm0, %v535_v1, %v536_v54  ;;  %v585_v11 = vsel %vm507_vm0, %v536_v54, 0.0 }
 0x160   : > { %v1165_v30 = vsel %vm1160_vm8, %v1148_v18, %v897_v26  ;;  %v1008_v56 = vpop.permute.xlu2 %1007  ;;  %v1040_v27 = vrot.slane %v537_v45, 2  ;;  %v989_v4 = vrot.slane %v585_v11, 1  ;;  %v1042_v17 = vrot.slane %v585_v11, 2 }
 0x161   : > { %v946_v9 = vpop.permute.xlu1 %945 }
 0x162   : > { %v1182_v44 = vsel %vm1177_vm9, %v1165_v30, %v946_v9 }
 0x163   : > { %v1199_v5 = vsel %vm1194_vm10, %v1182_v44, %v2634_v62 }
 0x165   : > { %959 = vrot.lane.b32.xlu0 %v2114_v12, %s1789_s27  ;;  %v987_v12 = vrot.slane %v537_v45, 1 }
 0x166   : > { %1066 = vrot.lane.b32.xlu2 %v2878_v16, %s1792_s29 }
 0x167   : > { %1013 = vrot.lane.b32.xlu1 %v2154_v31, %s1791_s20  ;;  %v1053_v61 = vpop.permute.xlu0 %1052  ;;  %v988_v3 = vsel %vm602_vm1, %v986_v15, %v987_v12  ;;  %v1039_v31 = vrot.slane %v575_v36, 2  ;;  %v990_v32 = vsel %vm602_vm1, %v987_v12, %v989_v4 }
 0x168   : > { %v1216_v13 = vsel %vm1211_vm11, %v1199_v5, %v1053_v61  ;;  %v1002_v22 = vpop.permute.xlu2 %1001 }
 0x169   : > { %v893_v21 = vpop.permute.xlu1 %892  ;;  %1566 = vmatmul.msk.f32.vlgmr.msra.gmra.mxu1 %vm1233_vm12, %v1216_v13  ;;  %v1041_v34 = vsel %vm691_vm2, %v1039_v31, %v1040_v27 }
 0x16a   : > { %v1163_v50 = vsel %vm1160_vm8, %v2497_v48, %v893_v21 }
 0x16d   : > { %916 = vrot.lane.b32.xlu0 %v2608_v42, %s1790_s18  ;;  %v1180_v42 = vsel %vm1177_vm9, %v1163_v50, %v2653_v25  ;;  %v1043_v25 = vsel %vm691_vm2, %v1040_v27, %v1042_v17 }
 0x16e   : > { %1019 = vrot.lane.b32.xlu2 %v988_v3, %s1791_s20 }
 0x16f   : > { %965 = vrot.lane.b32.xlu1 %v575_v36, %s1789_s27  ;;  %v905_v62 = vpop.permute.xlu0 %904 }
 0x170   : > { %v944_v51 = vpop.permute.xlu2 %943  ;;  %v1169_v63 = vsel %vm1160_vm8, %v2525_v59, %v905_v62 }
 0x171   : > { %v996_v16 = vpop.permute.xlu1 %995  ;;  %v1186_v7 = vsel %vm1177_vm9, %v1169_v63, %v2674_v2 }
 0x172   : > { %v1197_v46 = vsel %vm1194_vm10, %v1180_v42, %v996_v16  ;;  %v1203_v41 = vsel %vm1194_vm10, %v1186_v7, %v1008_v56 }
 0x175   : > { %1072 = vrot.lane.b32.xlu0 %v1041_v34, %s1792_s29 }
 0x176   : > { %967 = vrot.lane.b32.xlu2 %v537_v45, %s1789_s27  ;;  %s1579_s27 = sshll.u32 %s1771_s25, 1 }
 0x177   : > { %918 = vrot.lane.b32.xlu1 %v887_v10, %s1790_s18  ;;  %v1049_v6 = vpop.permute.xlu0 %1048  ;;  %s359_s18 = sand.u32 1, %s1759_s22  }
 0x178   : > { %v1214_v47 = vsel %vm1211_vm11, %v1197_v46, %v1049_v6  ;;  %v956_v24 = vpop.permute.xlu2 %955  ;;  %s1388_s25 = scalar_lea.sflag [#allocation3], %s359_s18 }
 0x179   : > { %v899_v48 = vpop.permute.xlu1 %898  ;;  %1564 = vmatmul.msk.f32.gmra.mxu0 %vm1233_vm12, %v1214_v47 }
 0x17a   : > { %v1166_v19 = vsel %vm1160_vm8, %v2511_v53, %v899_v48 }
 0x17d   : > { %1021 = vrot.lane.b32.xlu0 %v990_v32, %s1791_s20  ;;  %s1398_s20 = sadd.s32 %s1767_s24, %s1579_s27  ;;  %s1709_s27 = scalar_lea.hbm %s2853_s6, 32 }
 0x17e   : > { %s1580_s17 = sshll.u32 %s1398_s20, 3 }
 0x17f   : > { %1074 = vrot.lane.b32.xlu1 %v1043_v25, %s1792_s29  ;;  %v948_v43 = vpop.permute.xlu0 %947  ;;  %s1539_s29 = sshll.u32 %s359_s18, 3  ;;  %s1400_s7 = scalar_lea.hbm %s2853_s6, %s1580_s17 }
 0x180   : > { %v1183_v59 = vsel %vm1177_vm9, %v1166_v19, %v948_v43  ;;  %v1010_v37 = vpop.permute.xlu2 %1009  ;;  %s361_s30 = scalar_lea.vmem [#allocation2], %s1539_s29  ;;  %s1404_s12 = sshll.u32 %s1400_s7, 4  ;;  %s1405_s12 = int_to_ptr.hbm [resolvable:$true] %s1404_s12 }
 0x181   : > { %v1061_v57 = vpop.permute.xlu1 %1060  ;;  %v1200_v52 = vsel %vm1194_vm10, %v1183_v59, %v1002_v22  ;;  %s1402_s9 = sshll.u32 %s361_s30, 4  ;;  %s1703_s13 = sshra.s32 %s1405_s12, 4  ;;  %s1403_s9 = int_to_ptr.vmem [resolvable:$true] %s1402_s9  ;;  %s1704_s13 = int_to_ptr.hbm [resolvable:$true] %s1703_s13 }
 0x182   : > { %v1220_v35 = vsel %vm1211_vm11, %v1203_v41, %v1061_v57  ;;  %s1705_s24 = scalar_lea.hbm %s1704_s13, 8  ;;  %p1710_p10 = scmp.lt.s32.totalorder %s1704_s13, %s2853_s6 }
 0x183   : > { %1570 = vmatmul.msk.f32.vlgmr.msra.gmra.mxu2 %vm1233_vm12, %v1220_v35  ;;  %p1706_p6 = scmp.ne.s32.totalorder %s1704_s13, %s1705_s24  ;;  %p1711_p11 = scmp.lt.s32.totalorder %s1709_s27, %s1705_s24 }
 0x185   : > { %p1707_p7 = pnand %p1706_p6, %p1879_p3  ;;  %p1712_p12 = por %p1711_p11, %p1710_p10 }
 0x187   : > { %v1055_v28 = vpop.permute.xlu0 %1054  ;;  %p1708_p9 = pneg %p1707_p7 }
 0x188   : > { %v1217_v2 = vsel %vm1211_vm11, %v1200_v52, %v1055_v28  ;;  %v913_v26 = vpop.permute.xlu2 %912 }
 0x189   : > { %v895_v29 = vpop.permute.xlu1 %894  ;;  %1567 = vmatmul.msk.f32.gmra.mxu1 %vm1233_vm12, %v1217_v2  ;;  %v1173_v3 = vsel %vm1160_vm8, %v2620_v8, %v913_v26  ;;  %p1713_p13 = pnand %p1712_p12, %p1708_p9 }
 0x18a   : > { %v1164_v49 = vsel %vm1160_vm8, %v2549_v40, %v895_v29 }
 0x18b   : > { %v1181_v53 = vsel %vm1177_vm9, %v1164_v49, %v944_v51 }
 0x18f   : > { %v907_v10 = vpop.permute.xlu0 %906 }
 0x190   : > { %v1170_v56 = vsel %vm1160_vm8, %v2592_v33, %v907_v10  ;;  %v1057_v1 = vpop.permute.xlu2 %1056 }
 0x191   : > { %v998_v60 = vpop.permute.xlu1 %997  ;;  %v1187_v44 = vsel %vm1177_vm9, %v1170_v56, %v956_v24 }
 0x192   : > { %v1198_v18 = vsel %vm1194_vm10, %v1181_v53, %v998_v60  ;;  %v1204_v40 = vsel %vm1194_vm10, %v1187_v44, %v1010_v37 }
 0x197   : > { %v1051_v58 = vpop.permute.xlu0 %1050 }
 0x198   : > { %v1215_v30 = vsel %vm1211_vm11, %v1198_v18, %v1051_v58  ;;  %v909_v45 = vpop.permute.xlu2 %908 }
 0x199   : > { %v901_v9 = vpop.permute.xlu1 %900  ;;  %1565 = vmatmul.msk.f32.gmra.mxu0 %vm1233_vm12, %v1215_v30  ;;  %v1171_v51 = vsel %vm1160_vm8, %v2599_v20, %v909_v45 }
 0x19a   : > { %v1167_v5 = vsel %vm1160_vm8, %v2576_v23, %v901_v9 }
 0x19f   : > { %v950_v54 = vpop.permute.xlu0 %949 }
 0x1a0   : > { %v1184_v15 = vsel %vm1177_vm9, %v1167_v5, %v950_v54  ;;  %v1012_v62 = vpop.permute.xlu2 %1011 }
 0x1a1   : > { %v1063_v36 = vpop.permute.xlu1 %1062 }
 0x1a2   : > { %v1221_v61 = vsel %vm1211_vm11, %v1204_v40, %v1063_v36 }
 0x1a3   : > { %1571 = vmatmul.msk.f32.gmra.mxu2 %vm1233_vm12, %v1221_v61 }
 0x1a7   : > { %v1004_v13 = vpop.permute.xlu0 %1003 }
 0x1a8   : > { %v1201_v33 = vsel %vm1194_vm10, %v1184_v15, %v1004_v13  ;;  %v915_v11 = vpop.permute.xlu2 %914 }
 0x1a9   : > { %v962_v21 = vpop.permute.xlu1 %961  ;;  %v1218_v12 = vsel %vm1211_vm11, %v1201_v33, %v1057_v1  ;;  %v1174_v7 = vsel %vm1160_vm8, %v2624_v55, %v915_v11 }
 0x1aa   : > { %1568 = vmatmul.msk.f32.gmra.mxu1 %vm1233_vm12, %v1218_v12  ;;  %v1190_v22 = vsel %vm1177_vm9, %v1173_v3, %v962_v21 }
 0x1af   : > { %v1016_v31 = vpop.permute.xlu0 %1015 }
 0x1b0   : > { %v1207_v27 = vsel %vm1194_vm10, %v1190_v22, %v1016_v31  ;;  %v1059_v47 = vpop.permute.xlu2 %1058 }
 0x1b1   : > { %v1069_v23 = vpop.permute.xlu1 %1068 }
 0x1b2   : > { %v1224_v16 = vsel %vm1211_vm11, %v1207_v27, %v1069_v23 }
 0x1b3   : > { %1574 = vmatmul.msk.f32.vlgmr.msra.gmra.mxu3 %vm1233_vm12, %v1224_v16 }
 0x1b7   : > { %v958_v34 = vpop.permute.xlu0 %957 }
 0x1b8   : > { %v1188_v42 = vsel %vm1177_vm9, %v1171_v51, %v958_v34  ;;  %v911_v57 = vpop.permute.xlu2 %910 }
 0x1b9   : > { %v903_v50 = vpop.permute.xlu1 %902  ;;  %v1205_v46 = vsel %vm1194_vm10, %v1188_v42, %v1012_v62  ;;  %v1172_v59 = vsel %vm1160_vm8, %v2537_v0, %v911_v57 }
 0x1ba   : > { %v1168_v17 = vsel %vm1160_vm8, %v2582_v39, %v903_v50 }
 0x1bf   : > { %v952_v8 = vpop.permute.xlu0 %951 }
 0x1c0   : > { %v1185_v48 = vsel %vm1177_vm9, %v1168_v17, %v952_v8  ;;  %v1067_v55 = vpop.permute.xlu2 %1066 }
 0x1c1   : > { %v1065_v4 = vpop.permute.xlu1 %1064 }
 0x1c2   : > { %v1222_v6 = vsel %vm1211_vm11, %v1205_v46, %v1065_v4 }
 0x1c3   : > { %1572 = vmatmul.msk.f32.gmra.mxu2 %vm1233_vm12, %v1222_v6 }
 0x1c7   : > { %v1006_v32 = vpop.permute.xlu0 %1005 }
 0x1c8   : > { %v1202_v63 = vsel %vm1194_vm10, %v1185_v48, %v1006_v32  ;;  %v1020_v53 = vpop.permute.xlu2 %1019 }
 0x1c9   : > { %v964_v20 = vpop.permute.xlu1 %963  ;;  %v1219_v25 = vsel %vm1211_vm11, %v1202_v63, %v1059_v47 }
 0x1ca   : > { %1569 = vmatmul.msk.f32.gmra.mxu1 %vm1233_vm12, %v1219_v25  ;;  %v1191_v43 = vsel %vm1177_vm9, %v1174_v7, %v964_v20 }
 0x1cf   : > { %v1018_v24 = vpop.permute.xlu0 %1017 }
 0x1d0   : > { %v1208_v41 = vsel %vm1194_vm10, %v1191_v43, %v1018_v24  ;;  %v1303_v39 = vpop.f32.mrf.mxu0  ;;  %v968_v1 = vpop.permute.xlu2 %967 }
 0x1d1   : > { %v1071_v35 = vpop.permute.xlu1 %1070  ;;  %1351 = vxpose.xlu2.b32.start [1/16] (narrow) %v1303_v39, 8 }
 0x1d2   : > { %v1225_v19 = vsel %vm1211_vm11, %v1208_v41, %v1071_v35 }
 0x1d3   : > { %1575 = vmatmul.msk.f32.gmra.mxu3 %vm1233_vm12, %v1225_v19 }
 0x1d7   : > { %v960_v28 = vpop.permute.xlu0 %959 }
 0x1d8   : > { %v1189_v52 = vsel %vm1177_vm9, %v1172_v59, %v960_v28 }
 0x1d9   : > { %v1014_v2 = vpop.permute.xlu1 %1013  ;;  %v1306_v29 = vpop.f32.mrf.mxu0 }
 0x1da   : > { %v1206_v37 = vsel %vm1194_vm10, %v1189_v52, %v1014_v2  ;;  %1352 = vxpose.xlu2.b32.cont [2/16] (narrow) %v1306_v29, 8 }
 0x1db   : > { %v1223_v10 = vsel %vm1211_vm11, %v1206_v37, %v1067_v55 }
 0x1dc   : > { %1573 = vmatmul.msk.f32.gmra.mxu2 %vm1233_vm12, %v1223_v10 }
 0x1df   : > { %v917_v60 = vpop.permute.xlu0 %916 }
 0x1e0   : > { %v1175_v49 = vsel %vm1160_vm8, %v2552_v38, %v917_v60 }
 0x1e1   : > { %v966_v26 = vpop.permute.xlu1 %965 }
 0x1e2   : > { %v1192_v0 = vsel %vm1177_vm9, %v1175_v49, %v966_v26 }
 0x1e3   : > { %v1209_v18 = vsel %vm1194_vm10, %v1192_v0, %v1020_v53 }
 0x1e6   : > { %v1315_v15 = vpop.f32.mrf.mxu1 }
 0x1e7   : > { %v1073_v58 = vpop.permute.xlu0 %1072 }
 0x1e8   : > { %v1226_v30 = vsel %vm1211_vm11, %v1209_v18, %v1073_v58 }
 0x1e9   : > { %v919_v9 = vpop.permute.xlu1 %918  ;;  %1576 = vmatmul.msk.f32.gmra.mxu3 %vm1233_vm12, %v1226_v30 }
 0x1ea   : > { %v1176_v56 = vsel %vm1160_vm8, %v2638_v14, %v919_v9 }
 0x1eb   : > { %v1193_v44 = vsel %vm1177_vm9, %v1176_v56, %v968_v1 }
 0x1ef   : > { %v1022_v54 = vpop.permute.xlu0 %1021 }
 0x1f0   : > { %v1210_v38 = vsel %vm1194_vm10, %v1193_v44, %v1022_v54 }
 0x1f1   : > { %v1075_v36 = vpop.permute.xlu1 %1074 }
 0x1f2   : > { %v1227_v40 = vsel %vm1211_vm11, %v1210_v38, %v1075_v36 }
 0x1f3   : > { %1577 = vmatmul.msk.f32.gmra.mxu3 %vm1233_vm12, %v1227_v40 }
 0x1f6   : > { %v1309_v61 = vpop.f32.mrf.mxu0 }
 0x1f7   : > { %1353 = vxpose.xlu2.b32.cont [3/16] (narrow) %v1309_v61, 8 }
 0x206   : > { %v1318_v13 = vpop.f32.mrf.mxu1  ;;  %v1327_v33 = vpop.f32.mrf.mxu2 }
 0x216   : > { %v1312_v5 = vpop.f32.mrf.mxu0 }
 0x217   : > { %1354 = vxpose.xlu2.b32.cont [4/16] (narrow) %v1312_v5, 8 }
 0x21f   : > { %1355 = vxpose.xlu2.b32.cont [5/16] (narrow) %v1315_v15, 8 }
 0x226   : > { %v1330_v21 = vpop.f32.mrf.mxu2 }
 0x227   : > { %1356 = vxpose.xlu2.b32.cont [6/16] (narrow) %v1318_v13, 8  ;;  %v1321_v14 = vpop.f32.mrf.mxu1 }
 0x22f   : > { %1357 = vxpose.xlu2.b32.cont [7/16] (narrow) %v1321_v14, 8 }
 0x236   : > { %v1339_v22 = vpop.f32.mrf.mxu3 }
 0x246   : > { %v1333_v12 = vpop.f32.mrf.mxu2 }
 0x247   : > { %v1324_v45 = vpop.f32.mrf.mxu1 }
 0x248   : > { %1358 = vxpose.xlu2.b32.cont [8/16] (narrow) %v1324_v45, 8 }
 0x250   : > { %1359 = vxpose.xlu2.b32.cont [9/16] (narrow) %v1327_v33, 8 }
 0x256   : > { %v1342_v31 = vpop.f32.mrf.mxu3 }
 0x258   : > { %1360 = vxpose.xlu2.b32.cont [10/16] (narrow) %v1330_v21, 8 }
 0x25f   : > { %v1336_v3 = vpop.f32.mrf.mxu2 }
 0x260   : > { %1361 = vxpose.xlu2.b32.cont [11/16] (narrow) %v1333_v12, 8 }
 0x268   : > { %1362 = vxpose.xlu2.b32.cont [12/16] (narrow) %v1336_v3, 8 }
 0x26c   : > { %v1345_v27 = vpop.f32.mrf.mxu3 }
 0x270   : > { %1363 = vxpose.xlu2.b32.cont [13/16] (narrow) %v1339_v22, 8 }
 0x276   : > { %v1348_v23 = vpop.f32.mrf.mxu3 }
 0x278   : > { %1364 = vxpose.xlu2.b32.cont [14/16] (narrow) %v1342_v31, 8 }
 0x280   : > { %1365 = vxpose.xlu2.b32.cont [15/16] (narrow) %v1345_v27, 8 }
 0x288   : > { %1366 = vxpose.xlu2.b32.end [16/16] (narrow) %v1348_v23, 8 }
 0x2a9   : > { %v1367_v62 = vpop.trf.xlu2 }
 0x2aa   : > { %vm1383_vm13 = vcmp.gt.f32.partialorder %v1367_v62, 0.0  ;;  %v1384_v16 = vmul.f32 0.1, %v1367_v62 }
 0x2ac   : > { %v1385_v34 = vsel %vm1383_vm13, %v1367_v62, %v1384_v16 }
 0x2ad   : > { %1386 = vst [vmem:[%s361_s30] sm:$0xff] %v1385_v34 }
 0x2ae   : > { %1716 = shalt.err (!%p1713_p13)
}
 0x2af   : > { %1606 = dma.vmem_to_hbm [thread:$0]  (%p1879_p3), %s1403_s9, 128, %s1405_s12, %s1388_s25  }
 0x2b0 PF: > { %p1612_p0 = scmp.ge.s32.totalorder %s1783_s28, 2  ;;  %s1416_s18 = sand.u32 1, %s1755_s21  }
 0x2b1   : > { %s1417_s17 = scalar_lea.sflag [#allocation3], %s1416_s18 }
 0x2b2   : > { %p1609_p1 = pnand %p1612_p0, %p1888_p8 }
 0x2b4   : > { %p1610_p2 = pneg %p1609_p1 }
 0x2b6   : > { %1750 = dma.done.wait (%p1610_p2), %s1417_s17, 128  }
 0x2b7   : > { %1752 = vsyncadd (%p1610_p2), %s1417_s17, 4294967168  ;;  %s19_s28 = sadd.s32 1, %s1783_s28   ;;  %s2880_s25 = sld [smem:[#allocation5_spill]] }
 0x2b8   : > { %p16_p4 = scmp.ge.s32.totalorder %s19_s28, 6   ;;  %s2881_s10 = sld [smem:[#allocation6_spill]] }
 0x2b9   : > { %s2882_s27 = sld [smem:[#allocation7_spill]]  ;;  %s2883_s21 = smov %s1759_s22 }
 0x2ba   : > { %s2884_s22 = smov %s1763_s23  ;;  %s2885_s23 = smov %s1897_s15 }
 0x2bb   : > { %s2886_s24 = smov %s1775_s26  ;;  %18 = sbr.rel (!%p16_p4) target bundleno = 5 (0x5), region = 85 }
 0x2be   : > { %s2887_s26 = smov %s2881_s10 }
 0x2c0   :  { %1423 = vsyncpa [#allocation3], 1 }
 0x2c1   :  { %1425 = vsyncpa [#allocation3 + $0x1], 1 }

</bundles_post_ra>
